<compile_context>
chip_gen: v7x
topology: tpu7x:2x2x1
jax: 0.10.0
libtpu: 0.0.40
codegen_flags: <defaults>
</compile_context>

<pallas_src>
import functools

import jax
import jax.numpy as jnp
from jax.experimental import pallas as pl
from jax.experimental.pallas import tpu as pltpu


# -----------------------------------------------------------------------------
# In-kernel helpers (traced inside the kernel body).
# -----------------------------------------------------------------------------
def _window_max(tmp_ref, n_valid, P):
    """Running max over P shifted reads of a staging buffer of width n_valid + P - 1.

    Valid pooled values end up at the per-segment window-start positions; all other
    positions (including cross-segment / tail reads) are discarded by the selector
    matmul that follows.
    """
    m = tmp_ref[:, 0:n_valid]
    for p in range(1, P):
        m = jnp.maximum(m, tmp_ref[:, p:p + n_valid])
    return m


def _pool_scatter_matrix(B, L_out, L_pool, P, pad_next):
    """One-hot (B*L_out, B*(L_pool + 2*pad_next)) map built from iotas.

    Column (b, pad_next + j) selects row b*L_out + P*j (a pooling window start);
    padding columns are all-zero, so `m @ D` simultaneously decimates by the pool
    stride AND writes the zero-padded layout of the next layer. No integer div/mod
    (only compares / constant multiplies), B is unrolled in Python.
    """
    Lp = L_pool + 2 * pad_next
    n_in, n_out = B * L_out, B * Lp
    r = jax.lax.broadcasted_iota(jnp.int32, (n_in, n_out), 0)
    c = jax.lax.broadcasted_iota(jnp.int32, (n_in, n_out), 1)
    hit = jnp.zeros((n_in, n_out), jnp.bool_)
    for b in range(B):
        j = c - (b * Lp + pad_next)
        hit = hit | ((j >= 0) & (j < L_pool) & (r == b * L_out + P * j))
    return hit.astype(jnp.float32)


def _segment_mean_matrix(B, L_seg):
    """(B*L_seg, B) matrix averaging each batch segment (the x.mean(dim=-1))."""
    l_idx = jax.lax.broadcasted_iota(jnp.int32, (B * L_seg, B), 0)
    b_idx = jax.lax.broadcasted_iota(jnp.int32, (B * L_seg, B), 1)
    t = l_idx - b_idx * L_seg
    return jnp.where((t >= 0) & (t < L_seg), 1.0 / L_seg, 0.0).astype(jnp.float32)


# -----------------------------------------------------------------------------
# Fused forward pass: Conv1d(1->C1)+ReLU+Pool, Conv1d(C1->C2)+ReLU+Pool,
# Conv1d(C2->C3)+ReLU+Pool, mean over length, Linear.
# -----------------------------------------------------------------------------
def cnn_feature_extractor(x, params, *, pool):
    """x: (B, L) float32; params from init_params. Returns (B, fc_out) float32."""
    B, L0 = x.shape
    P = pool
    w1, b1 = params["w1"], params["b1"]   # (C1, 1,  K1), (C1,)
    w2, b2 = params["w2"], params["b2"]   # (C2, C1, K2), (C2,)
    w3, b3 = params["w3"], params["b3"]   # (C3, C2, K3), (C3,)
    wf, bf = params["wf"], params["bf"]   # (F,  C3),     (F,)

    C1, Cin0, K1 = w1.shape
    C2, _, K2 = w2.shape
    C3, _, K3 = w3.shape
    F = wf.shape[0]
    assert Cin0 == 1, "forward() does x.unsqueeze(1): conv1 input channels must be 1"

    p1, p2, p3 = 1, 2, 3                              # paddings fixed by the module

    # Conv output / pooled lengths (PyTorch floor semantics for MaxPool1d).
    L1 = L0 + 2 * p1 - K1 + 1; L1p = L1 // P
    L2 = L1p + 2 * p2 - K2 + 1; L2p = L2 // P
    L3 = L2p + 2 * p3 - K3 + 1; L3p = L3 // P
    Lp1 = L0 + 2 * p1
    Lp2 = L1p + 2 * p2
    Lp3 = L2p + 2 * p3

    f32 = jnp.float32

    # Host-side (XLA) layout plumbing only: fold batch into lanes, im2col-flatten
    # the conv weights (row index k*C_in + c_in), make biases 2-D columns.
    x2 = x.reshape(1, B * L0).astype(f32)
    w1f = w1[:, 0, :].astype(f32)                                         # (C1, K1)
    w2f = jnp.transpose(w2, (0, 2, 1)).reshape(C2, K2 * C1).astype(f32)   # (C2, K2*C1)
    w3f = jnp.transpose(w3, (0, 2, 1)).reshape(C3, K3 * C2).astype(f32)   # (C3, K3*C2)
    b1c = b1.reshape(C1, 1).astype(f32)
    b2c = b2.reshape(C2, 1).astype(f32)
    b3c = b3.reshape(C3, 1).astype(f32)
    wff = wf.astype(f32)                                                  # (F, C3)
    bfc = bf.reshape(F, 1).astype(f32)

    def kernel(x_ref, w1_ref, b1_ref, w2_ref, b2_ref, w3_ref, b3_ref,
               wf_ref, bf_ref, o_ref,
               pad1, tmp1, pad2, col2, tmp2, pad3, col3, tmp3):
        # Buffers whose padding columns / max-window tails must be exactly zero.
        for buf in (pad1, tmp1, tmp2, tmp3):
            buf[...] = jnp.zeros_like(buf)

        # ---- layer 1: Conv1d(1 -> C1, K1, pad=1) + ReLU (VPU broadcast FMA) ----
        w1v = w1_ref[...]                                   # (C1, K1)
        b1v = b1_ref[...]                                   # (C1, 1)
        for b in range(B):
            pad1[:, b * Lp1 + p1:b * Lp1 + p1 + L0] = x_ref[:, b * L0:(b + 1) * L0]
        for b in range(B):
            acc = jnp.zeros((C1, L1), f32)
            for k in range(K1):                             # C_in == 1: keep off the MXU
                acc = acc + w1v[:, k:k + 1] * pad1[0:1, b * Lp1 + k:b * Lp1 + k + L1]
            tmp1[:, b * L1:(b + 1) * L1] = jnp.maximum(acc + b1v, 0.0)

        # ---- pool 1: shifted-window max + decimate-and-zero-pad matmul ----
        m1 = _window_max(tmp1, B * L1, P)                                    # (C1, B*L1)
        pad2[...] = jnp.dot(m1, _pool_scatter_matrix(B, L1, L1p, P, p2),
                            preferred_element_type=f32)                     # (C1, B*Lp2)

        # ---- layer 2: Conv1d(C1 -> C2, K2, pad=2) + ReLU (one im2col matmul) ----
        for b in range(B):
            for k in range(K2):
                col2[k * C1:(k + 1) * C1, b * L2:(b + 1) * L2] = \
                    pad2[:, b * Lp2 + k:b * Lp2 + k + L2]
        act2 = jnp.dot(w2_ref[...], col2[...], preferred_element_type=f32)  # (C2, B*L2)
        tmp2[:, 0:B * L2] = jnp.maximum(act2 + b2_ref[...], 0.0)

        # ---- pool 2 ----
        m2 = _window_max(tmp2, B * L2, P)
        pad3[...] = jnp.dot(m2, _pool_scatter_matrix(B, L2, L2p, P, p3),
                            preferred_element_type=f32)                     # (C2, B*Lp3)

        # ---- layer 3: Conv1d(C2 -> C3, K3, pad=3) + ReLU (one im2col matmul) ----
        for b in range(B):
            for k in range(K3):
                col3[k * C2:(k + 1) * C2, b * L3:(b + 1) * L3] = \
                    pad3[:, b * Lp3 + k:b * Lp3 + k + L3]
        act3 = jnp.dot(w3_ref[...], col3[...], preferred_element_type=f32)  # (C3, B*L3)
        tmp3[:, 0:B * L3] = jnp.maximum(act3 + b3_ref[...], 0.0)

        # ---- pool 3 + mean over length + Linear head ----
        # TODO(synk): nn.Dropout is identity in eval mode; training-mode RNG dropout
        # is not implemented.
        m3 = _window_max(tmp3, B * L3, P)
        pooled3 = jnp.dot(m3, _pool_scatter_matrix(B, L3, L3p, P, 0),
                          preferred_element_type=f32)                       # (C3, B*L3p)
        feat = jnp.dot(pooled3, _segment_mean_matrix(B, L3p),
                       preferred_element_type=f32)                          # (C3, B)
        o_ref[...] = jnp.dot(wf_ref[...], feat,
                             preferred_element_type=f32) + bf_ref[...]      # (F, B)

    scratch = [
        pltpu.VMEM((1, B * Lp1), f32),            # pad1: zero-padded input, per segment
        pltpu.VMEM((C1, B * L1 + P - 1), f32),    # tmp1: layer-1 act + pool-window tail
        pltpu.VMEM((C1, B * Lp2), f32),           # pad2: zero-padded pooled layer-1 act
        pltpu.VMEM((K2 * C1, B * L2), f32),       # col2: im2col for layer 2
        pltpu.VMEM((C2, B * L2 + P - 1), f32),    # tmp2
        pltpu.VMEM((C2, B * Lp3), f32),           # pad3
        pltpu.VMEM((K3 * C2, B * L3), f32),       # col3: im2col for layer 3
        pltpu.VMEM((C3, B * L3 + P - 1), f32),    # tmp3
    ]

    out_fb = pl.pallas_call(
        kernel,
        out_shape=jax.ShapeDtypeStruct((F, B), f32),
        scratch_shapes=scratch,
    )(x2, w1f, b1c, w2f, b2c, w3f, b3c, wff, bfc)

    return out_fb.T                               # (B, F): matches the module's output


# -----------------------------------------------------------------------------
# Pure-JAX reference (for a correctness check) and PyTorch-style init.
# -----------------------------------------------------------------------------
def _reference_forward(x, params, *, pool):
    h = x[:, None, :].astype(jnp.float32)                     # (B, 1, L)
    for wk, bk, pad in (("w1", "b1", 1), ("w2", "b2", 2), ("w3", "b3", 3)):
        w = params[wk].astype(jnp.float32)
        b = params[bk].astype(jnp.float32)
        K = w.shape[-1]
        hp = jnp.pad(h, ((0, 0), (0, 0), (pad, pad)))
        L_out = hp.shape[-1] - K + 1
        cols = jnp.stack([hp[:, :, k:k + L_out] for k in range(K)], axis=-1)
        h = jnp.einsum("bilk,oik->bol", cols, w,
                       precision=jax.lax.Precision.HIGHEST) + b[None, :, None]
        h = jnp.maximum(h, 0.0)
        Lp = L_out // pool
        h = h[:, :, :Lp * pool].reshape(h.shape[0], h.shape[1], Lp, pool).max(-1)
    feat = h.mean(-1)                                          # (B, C3)
    return jnp.einsum("bc,fc->bf", feat, params["wf"].astype(jnp.float32),
                      precision=jax.lax.Precision.HIGHEST) + params["bf"][None, :]


def init_params(key, input_channels, c1, k1, c2, k2, c3, k3, fc_out):
    """Deterministic PyTorch-style uniform(-1/sqrt(fan_in), 1/sqrt(fan_in)) init."""
    def uniform(k, shape, fan_in):
        bound = 1.0 / float(fan_in) ** 0.5
        return jax.random.uniform(k, shape, jnp.float32, -bound, bound)

    ks = jax.random.split(key, 8)
    return {
        "w1": uniform(ks[0], (c1, input_channels, k1), input_channels * k1),
        "b1": uniform(ks[1], (c1,), input_channels * k1),
        "w2": uniform(ks[2], (c2, c1, k2), c1 * k2),
        "b2": uniform(ks[3], (c2,), c1 * k2),
        "w3": uniform(ks[4], (c3, c2, k3), c2 * k3),
        "b3": uniform(ks[5], (c3,), c2 * k3),
        "wf": uniform(ks[6], (fc_out, c3), c3),
        "bf": uniform(ks[7], (fc_out,), c3),
    }


if __name__ == "__main__":
    # Small config consistent with the module: input_channels=1 (forward does
    # x.unsqueeze(1)), conv channels 8/16/32, kernel sizes 3/5/7 (paddings 1/2/3
    # keep length), pooling_size=2, dropout inactive at inference, fc_out=16.
    B, L = 2, 64
    input_channels = 1
    c1, k1 = 8, 3
    c2, k2 = 16, 5
    c3, k3 = 32, 7
    pooling_size = 2
    fc_out_features = 16

    key = jax.random.PRNGKey(0)
    kx, kp = jax.random.split(key)
    x = jax.random.normal(kx, (B, L), jnp.float32)
    params = init_params(kp, input_channels, c1, k1, c2, k2, c3, k3, fc_out_features)

    fwd = jax.jit(functools.partial(cnn_feature_extractor, pool=pooling_size))
    out = fwd(x, params)
    jax.block_until_ready(out)

    assert out.shape == (B, fc_out_features), out.shape
    assert out.dtype == jnp.float32

    ref = _reference_forward(x, params, pool=pooling_size)
    max_err = float(jnp.max(jnp.abs(out - ref)))
    assert max_err < 5e-2, f"mismatch vs reference: max abs err = {max_err}"

    print("KERNEL_OK")
</pallas_src>

<mosaic_0001>
module attributes {stable_mosaic.version = 11 : i64} {
  func.func @kernel(%arg0: memref<1x128xf32, #tpu.memory_space<vmem>>, %arg1: memref<8x3xf32, #tpu.memory_space<vmem>>, %arg2: memref<8x1xf32, #tpu.memory_space<vmem>>, %arg3: memref<16x40xf32, #tpu.memory_space<vmem>>, %arg4: memref<16x1xf32, #tpu.memory_space<vmem>>, %arg5: memref<32x112xf32, #tpu.memory_space<vmem>>, %arg6: memref<32x1xf32, #tpu.memory_space<vmem>>, %arg7: memref<16x32xf32, #tpu.memory_space<vmem>>, %arg8: memref<16x1xf32, #tpu.memory_space<vmem>>, %arg9: memref<16x2xf32, #tpu.memory_space<vmem>>, %arg10: memref<1x132xf32, #tpu.memory_space<vmem>>, %arg11: memref<8x129xf32, #tpu.memory_space<vmem>>, %arg12: memref<8x72xf32, #tpu.memory_space<vmem>>, %arg13: memref<40x64xf32, #tpu.memory_space<vmem>>, %arg14: memref<16x65xf32, #tpu.memory_space<vmem>>, %arg15: memref<16x44xf32, #tpu.memory_space<vmem>>, %arg16: memref<112x32xf32, #tpu.memory_space<vmem>>, %arg17: memref<32x33xf32, #tpu.memory_space<vmem>>) attributes {dimension_semantics = [], scalar_prefetch = 0 : i64, scratch_operands = 8 : i64, tpu.core_type = #tpu.core_type<tc>} {
    %cst = arith.constant 0.000000e+00 : f32
    %0 = vector.broadcast %cst : f32 to vector<1x132xf32>
    %c0 = arith.constant 0 : index
    %c0_0 = arith.constant 0 : index
    %1 = vector.load %arg10[%c0, %c0_0] : memref<1x132xf32, #tpu.memory_space<vmem>>, vector<1x132xf32>
    tpu.vector_store %arg10[%c0, %c0_0], %0 {strides = array<i32>} : memref<1x132xf32, #tpu.memory_space<vmem>>, vector<1x132xf32>,
    %cst_1 = arith.constant 0.000000e+00 : f32
    %2 = vector.broadcast %cst_1 : f32 to vector<8x129xf32>
    %c0_2 = arith.constant 0 : index
    %c0_3 = arith.constant 0 : index
    %3 = vector.load %arg11[%c0_2, %c0_3] : memref<8x129xf32, #tpu.memory_space<vmem>>, vector<8x129xf32>
    tpu.vector_store %arg11[%c0_2, %c0_3], %2 {strides = array<i32>} : memref<8x129xf32, #tpu.memory_space<vmem>>, vector<8x129xf32>,
    %cst_4 = arith.constant 0.000000e+00 : f32
    %4 = vector.broadcast %cst_4 : f32 to vector<16x65xf32>
    %c0_5 = arith.constant 0 : index
    %c0_6 = arith.constant 0 : index
    %5 = vector.load %arg14[%c0_5, %c0_6] : memref<16x65xf32, #tpu.memory_space<vmem>>, vector<16x65xf32>
    tpu.vector_store %arg14[%c0_5, %c0_6], %4 {strides = array<i32>} : memref<16x65xf32, #tpu.memory_space<vmem>>, vector<16x65xf32>,
    %cst_7 = arith.constant 0.000000e+00 : f32
    %6 = vector.broadcast %cst_7 : f32 to vector<32x33xf32>
    %c0_8 = arith.constant 0 : index
    %c0_9 = arith.constant 0 : index
    %7 = vector.load %arg17[%c0_8, %c0_9] : memref<32x33xf32, #tpu.memory_space<vmem>>, vector<32x33xf32>
    tpu.vector_store %arg17[%c0_8, %c0_9], %6 {strides = array<i32>} : memref<32x33xf32, #tpu.memory_space<vmem>>, vector<32x33xf32>,
    %c0_10 = arith.constant 0 : index
    %c0_11 = arith.constant 0 : index
    %8 = vector.load %arg1[%c0_10, %c0_11] : memref<8x3xf32, #tpu.memory_space<vmem>>, vector<8x3xf32>
    %c0_12 = arith.constant 0 : index
    %c0_13 = arith.constant 0 : index
    %9 = vector.load %arg2[%c0_12, %c0_13] : memref<8x1xf32, #tpu.memory_space<vmem>>, vector<8x1xf32>
    %c0_14 = arith.constant 0 : index
    %c0_15 = arith.constant 0 : index
    %10 = vector.load %arg0[%c0_14, %c0_15] : memref<1x128xf32, #tpu.memory_space<vmem>>, vector<1x64xf32>
    %c0_16 = arith.constant 0 : index
    %c1 = arith.constant 1 : index
    %11 = vector.load %arg10[%c0_16, %c1] : memref<1x132xf32, #tpu.memory_space<vmem>>, vector<1x64xf32>
    tpu.vector_store %arg10[%c0_16, %c1], %10 {strides = array<i32>} : memref<1x132xf32, #tpu.memory_space<vmem>>, vector<1x64xf32>,
    %c0_17 = arith.constant 0 : index
    %c64 = arith.constant 64 : index
    %12 = vector.load %arg0[%c0_17, %c64] : memref<1x128xf32, #tpu.memory_space<vmem>>, vector<1x64xf32>
    %c0_18 = arith.constant 0 : index
    %c67 = arith.constant 67 : index
    %13 = vector.load %arg10[%c0_18, %c67] : memref<1x132xf32, #tpu.memory_space<vmem>>, vector<1x64xf32>
    tpu.vector_store %arg10[%c0_18, %c67], %12 {strides = array<i32>} : memref<1x132xf32, #tpu.memory_space<vmem>>, vector<1x64xf32>,
    %cst_19 = arith.constant 0.000000e+00 : f32
    %14 = vector.broadcast %cst_19 : f32 to vector<8x64xf32>
    %15 = vector.extract_strided_slice %8 {offsets = [0, 0], sizes = [8, 1], strides = [1, 1]} : vector<8x3xf32> to vector<8x1xf32>
    %c0_20 = arith.constant 0 : index
    %c0_21 = arith.constant 0 : index
    %16 = vector.load %arg10[%c0_20, %c0_21] : memref<1x132xf32, #tpu.memory_space<vmem>>, vector<1x64xf32>
    %17 = vector.broadcast %15 : vector<8x1xf32> to vector<8x64xf32>
    %18 = vector.broadcast %16 : vector<1x64xf32> to vector<8x64xf32>
    %19 = arith.mulf %17, %18 : vector<8x64xf32>
    %20 = arith.addf %14, %19 : vector<8x64xf32>
    %21 = vector.extract_strided_slice %8 {offsets = [0, 1], sizes = [8, 1], strides = [1, 1]} : vector<8x3xf32> to vector<8x1xf32>
    %c0_22 = arith.constant 0 : index
    %c1_23 = arith.constant 1 : index
    %22 = vector.load %arg10[%c0_22, %c1_23] : memref<1x132xf32, #tpu.memory_space<vmem>>, vector<1x64xf32>
    %23 = vector.broadcast %21 : vector<8x1xf32> to vector<8x64xf32>
    %24 = vector.broadcast %22 : vector<1x64xf32> to vector<8x64xf32>
    %25 = arith.mulf %23, %24 : vector<8x64xf32>
    %26 = arith.addf %20, %25 : vector<8x64xf32>
    %27 = vector.extract_strided_slice %8 {offsets = [0, 2], sizes = [8, 1], strides = [1, 1]} : vector<8x3xf32> to vector<8x1xf32>
    %c0_24 = arith.constant 0 : index
    %c2 = arith.constant 2 : index
    %28 = vector.load %arg10[%c0_24, %c2] : memref<1x132xf32, #tpu.memory_space<vmem>>, vector<1x64xf32>
    %29 = vector.broadcast %27 : vector<8x1xf32> to vector<8x64xf32>
    %30 = vector.broadcast %28 : vector<1x64xf32> to vector<8x64xf32>
    %31 = arith.mulf %29, %30 : vector<8x64xf32>
    %32 = arith.addf %26, %31 : vector<8x64xf32>
    %33 = vector.broadcast %9 : vector<8x1xf32> to vector<8x64xf32>
    %34 = arith.addf %32, %33 : vector<8x64xf32>
    %cst_25 = arith.constant 0.000000e+00 : f32
    %35 = vector.broadcast %cst_25 : f32 to vector<8x64xf32>
    %36 = arith.maximumf %34, %35 : vector<8x64xf32>
    %c0_26 = arith.constant 0 : index
    %c0_27 = arith.constant 0 : index
    %37 = vector.load %arg11[%c0_26, %c0_27] : memref<8x129xf32, #tpu.memory_space<vmem>>, vector<8x64xf32>
    tpu.vector_store %arg11[%c0_26, %c0_27], %36 {strides = array<i32>} : memref<8x129xf32, #tpu.memory_space<vmem>>, vector<8x64xf32>,
    %cst_28 = arith.constant 0.000000e+00 : f32
    %38 = vector.broadcast %cst_28 : f32 to vector<8x64xf32>
    %39 = vector.extract_strided_slice %8 {offsets = [0, 0], sizes = [8, 1], strides = [1, 1]} : vector<8x3xf32> to vector<8x1xf32>
    %c0_29 = arith.constant 0 : index
    %c66 = arith.constant 66 : index
    %40 = vector.load %arg10[%c0_29, %c66] : memref<1x132xf32, #tpu.memory_space<vmem>>, vector<1x64xf32>
    %41 = vector.broadcast %39 : vector<8x1xf32> to vector<8x64xf32>
    %42 = vector.broadcast %40 : vector<1x64xf32> to vector<8x64xf32>
    %43 = arith.mulf %41, %42 : vector<8x64xf32>
    %44 = arith.addf %38, %43 : vector<8x64xf32>
    %45 = vector.extract_strided_slice %8 {offsets = [0, 1], sizes = [8, 1], strides = [1, 1]} : vector<8x3xf32> to vector<8x1xf32>
    %c0_30 = arith.constant 0 : index
    %c67_31 = arith.constant 67 : index
    %46 = vector.load %arg10[%c0_30, %c67_31] : memref<1x132xf32, #tpu.memory_space<vmem>>, vector<1x64xf32>
    %47 = vector.broadcast %45 : vector<8x1xf32> to vector<8x64xf32>
    %48 = vector.broadcast %46 : vector<1x64xf32> to vector<8x64xf32>
    %49 = arith.mulf %47, %48 : vector<8x64xf32>
    %50 = arith.addf %44, %49 : vector<8x64xf32>
    %51 = vector.extract_strided_slice %8 {offsets = [0, 2], sizes = [8, 1], strides = [1, 1]} : vector<8x3xf32> to vector<8x1xf32>
    %c0_32 = arith.constant 0 : index
    %c68 = arith.constant 68 : index
    %52 = vector.load %arg10[%c0_32, %c68] : memref<1x132xf32, #tpu.memory_space<vmem>>, vector<1x64xf32>
    %53 = vector.broadcast %51 : vector<8x1xf32> to vector<8x64xf32>
    %54 = vector.broadcast %52 : vector<1x64xf32> to vector<8x64xf32>
    %55 = arith.mulf %53, %54 : vector<8x64xf32>
    %56 = arith.addf %50, %55 : vector<8x64xf32>
    %57 = vector.broadcast %9 : vector<8x1xf32> to vector<8x64xf32>
    %58 = arith.addf %56, %57 : vector<8x64xf32>
    %cst_33 = arith.constant 0.000000e+00 : f32
    %59 = vector.broadcast %cst_33 : f32 to vector<8x64xf32>
    %60 = arith.maximumf %58, %59 : vector<8x64xf32>
    %c0_34 = arith.constant 0 : index
    %c64_35 = arith.constant 64 : index
    %61 = vector.load %arg11[%c0_34, %c64_35] : memref<8x129xf32, #tpu.memory_space<vmem>>, vector<8x64xf32>
    tpu.vector_store %arg11[%c0_34, %c64_35], %60 {strides = array<i32>} : memref<8x129xf32, #tpu.memory_space<vmem>>, vector<8x64xf32>,
    %c0_36 = arith.constant 0 : index
    %c0_37 = arith.constant 0 : index
    %62 = vector.load %arg11[%c0_36, %c0_37] : memref<8x129xf32, #tpu.memory_space<vmem>>, vector<8x128xf32>
    %c0_38 = arith.constant 0 : index
    %c1_39 = arith.constant 1 : index
    %63 = vector.load %arg11[%c0_38, %c1_39] : memref<8x129xf32, #tpu.memory_space<vmem>>, vector<8x128xf32>
    %64 = arith.maximumf %62, %63 : vector<8x128xf32>
    %65 = tpu.iota {dimensions = array<i32: 0>} : vector<128x72xi32>
    %66 = tpu.iota {dimensions = array<i32: 1>} : vector<128x72xi32>
    %false = arith.constant false
    %67 = vector.broadcast %false : i1 to vector<128x72xi1>
    %c2_i32 = arith.constant 2 : i32
    %68 = vector.broadcast %c2_i32 : i32 to vector<128x72xi32>
    %69 = arith.subi %66, %68 : vector<128x72xi32>
    %c0_i32 = arith.constant 0 : i32
    %70 = vector.broadcast %c0_i32 : i32 to vector<128x72xi32>
    %71 = arith.cmpi sge, %69, %70 : vector<128x72xi32>
    %c32_i32 = arith.constant 32 : i32
    %72 = vector.broadcast %c32_i32 : i32 to vector<128x72xi32>
    %73 = arith.cmpi slt, %69, %72 : vector<128x72xi32>
    %74 = arith.andi %71, %73 : vector<128x72xi1>
    %c2_i32_40 = arith.constant 2 : i32
    %75 = vector.broadcast %c2_i32_40 : i32 to vector<128x72xi32>
    %76 = arith.muli %75, %69 : vector<128x72xi32>
    %c0_i32_41 = arith.constant 0 : i32
    %77 = vector.broadcast %c0_i32_41 : i32 to vector<128x72xi32>
    %78 = arith.addi %77, %76 : vector<128x72xi32>
    %79 = arith.cmpi eq, %65, %78 : vector<128x72xi32>
    %80 = arith.andi %74, %79 : vector<128x72xi1>
    %81 = arith.ori %67, %80 : vector<128x72xi1>
    %c38_i32 = arith.constant 38 : i32
    %82 = vector.broadcast %c38_i32 : i32 to vector<128x72xi32>
    %83 = arith.subi %66, %82 : vector<128x72xi32>
    %c0_i32_42 = arith.constant 0 : i32
    %84 = vector.broadcast %c0_i32_42 : i32 to vector<128x72xi32>
    %85 = arith.cmpi sge, %83, %84 : vector<128x72xi32>
    %c32_i32_43 = arith.constant 32 : i32
    %86 = vector.broadcast %c32_i32_43 : i32 to vector<128x72xi32>
    %87 = arith.cmpi slt, %83, %86 : vector<128x72xi32>
    %88 = arith.andi %85, %87 : vector<128x72xi1>
    %c2_i32_44 = arith.constant 2 : i32
    %89 = vector.broadcast %c2_i32_44 : i32 to vector<128x72xi32>
    %90 = arith.muli %89, %83 : vector<128x72xi32>
    %c64_i32 = arith.constant 64 : i32
    %91 = vector.broadcast %c64_i32 : i32 to vector<128x72xi32>
    %92 = arith.addi %91, %90 : vector<128x72xi32>
    %93 = arith.cmpi eq, %65, %92 : vector<128x72xi32>
    %94 = arith.andi %88, %93 : vector<128x72xi1>
    %95 = arith.ori %81, %94 : vector<128x72xi1>
    %96 = arith.extui %95 : vector<128x72xi1> to vector<128x72xi32>
    %97 = arith.sitofp %96 : vector<128x72xi32> to vector<128x72xf32>
    %cst_45 = arith.constant dense<0.000000e+00> : vector<8x72xf32>
    %98 = tpu.matmul %64, %97, %cst_45 {dimension_numbers = #tpu.dot_dimension_numbers<[1], [0], [0], [1], [0, 0, 1, 1], [], []>} : vector<8x128xf32>, vector<128x72xf32>, vector<8x72xf32> -> vector<8x72xf32>
    %c0_46 = arith.constant 0 : index
    %c0_47 = arith.constant 0 : index
    %99 = vector.load %arg12[%c0_46, %c0_47] : memref<8x72xf32, #tpu.memory_space<vmem>>, vector<8x72xf32>
    tpu.vector_store %arg12[%c0_46, %c0_47], %98 {strides = array<i32>} : memref<8x72xf32, #tpu.memory_space<vmem>>, vector<8x72xf32>,
    %c0_48 = arith.constant 0 : index
    %c0_49 = arith.constant 0 : index
    %100 = vector.load %arg12[%c0_48, %c0_49] : memref<8x72xf32, #tpu.memory_space<vmem>>, vector<8x32xf32>
    %c0_50 = arith.constant 0 : index
    %c0_51 = arith.constant 0 : index
    %101 = vector.load %arg13[%c0_50, %c0_51] : memref<40x64xf32, #tpu.memory_space<vmem>>, vector<8x32xf32>
    tpu.vector_store %arg13[%c0_50, %c0_51], %100 {strides = array<i32>} : memref<40x64xf32, #tpu.memory_space<vmem>>, vector<8x32xf32>,
    %c0_52 = arith.constant 0 : index
    %c1_53 = arith.constant 1 : index
    %102 = vector.load %arg12[%c0_52, %c1_53] : memref<8x72xf32, #tpu.memory_space<vmem>>, vector<8x32xf32>
    %c8 = arith.constant 8 : index
    %c0_54 = arith.constant 0 : index
    %103 = vector.load %arg13[%c8, %c0_54] : memref<40x64xf32, #tpu.memory_space<vmem>>, vector<8x32xf32>
    tpu.vector_store %arg13[%c8, %c0_54], %102 {strides = array<i32>} : memref<40x64xf32, #tpu.memory_space<vmem>>, vector<8x32xf32>,
    %c0_55 = arith.constant 0 : index
    %c2_56 = arith.constant 2 : index
    %104 = vector.load %arg12[%c0_55, %c2_56] : memref<8x72xf32, #tpu.memory_space<vmem>>, vector<8x32xf32>
    %c16 = arith.constant 16 : index
    %c0_57 = arith.constant 0 : index
    %105 = vector.load %arg13[%c16, %c0_57] : memref<40x64xf32, #tpu.memory_space<vmem>>, vector<8x32xf32>
    tpu.vector_store %arg13[%c16, %c0_57], %104 {strides = array<i32>} : memref<40x64xf32, #tpu.memory_space<vmem>>, vector<8x32xf32>,
    %c0_58 = arith.constant 0 : index
    %c3 = arith.constant 3 : index
    %106 = vector.load %arg12[%c0_58, %c3] : memref<8x72xf32, #tpu.memory_space<vmem>>, vector<8x32xf32>
    %c24 = arith.constant 24 : index
    %c0_59 = arith.constant 0 : index
    %107 = vector.load %arg13[%c24, %c0_59] : memref<40x64xf32, #tpu.memory_space<vmem>>, vector<8x32xf32>
    tpu.vector_store %arg13[%c24, %c0_59], %106 {strides = array<i32>} : memref<40x64xf32, #tpu.memory_space<vmem>>, vector<8x32xf32>,
    %c0_60 = arith.constant 0 : index
    %c4 = arith.constant 4 : index
    %108 = vector.load %arg12[%c0_60, %c4] : memref<8x72xf32, #tpu.memory_space<vmem>>, vector<8x32xf32>
    %c32 = arith.constant 32 : index
    %c0_61 = arith.constant 0 : index
    %109 = vector.load %arg13[%c32, %c0_61] : memref<40x64xf32, #tpu.memory_space<vmem>>, vector<8x32xf32>
    tpu.vector_store %arg13[%c32, %c0_61], %108 {strides = array<i32>} : memref<40x64xf32, #tpu.memory_space<vmem>>, vector<8x32xf32>,
    %c0_62 = arith.constant 0 : index
    %c36 = arith.constant 36 : index
    %110 = vector.load %arg12[%c0_62, %c36] : memref<8x72xf32, #tpu.memory_space<vmem>>, vector<8x32xf32>
    %c0_63 = arith.constant 0 : index
    %c32_64 = arith.constant 32 : index
    %111 = vector.load %arg13[%c0_63, %c32_64] : memref<40x64xf32, #tpu.memory_space<vmem>>, vector<8x32xf32>
    tpu.vector_store %arg13[%c0_63, %c32_64], %110 {strides = array<i32>} : memref<40x64xf32, #tpu.memory_space<vmem>>, vector<8x32xf32>,
    %c0_65 = arith.constant 0 : index
    %c37 = arith.constant 37 : index
    %112 = vector.load %arg12[%c0_65, %c37] : memref<8x72xf32, #tpu.memory_space<vmem>>, vector<8x32xf32>
    %c8_66 = arith.constant 8 : index
    %c32_67 = arith.constant 32 : index
    %113 = vector.load %arg13[%c8_66, %c32_67] : memref<40x64xf32, #tpu.memory_space<vmem>>, vector<8x32xf32>
    tpu.vector_store %arg13[%c8_66, %c32_67], %112 {strides = array<i32>} : memref<40x64xf32, #tpu.memory_space<vmem>>, vector<8x32xf32>,
    %c0_68 = arith.constant 0 : index
    %c38 = arith.constant 38 : index
    %114 = vector.load %arg12[%c0_68, %c38] : memref<8x72xf32, #tpu.memory_space<vmem>>, vector<8x32xf32>
    %c16_69 = arith.constant 16 : index
    %c32_70 = arith.constant 32 : index
    %115 = vector.load %arg13[%c16_69, %c32_70] : memref<40x64xf32, #tpu.memory_space<vmem>>, vector<8x32xf32>
    tpu.vector_store %arg13[%c16_69, %c32_70], %114 {strides = array<i32>} : memref<40x64xf32, #tpu.memory_space<vmem>>, vector<8x32xf32>,
    %c0_71 = arith.constant 0 : index
    %c39 = arith.constant 39 : index
    %116 = vector.load %arg12[%c0_71, %c39] : memref<8x72xf32, #tpu.memory_space<vmem>>, vector<8x32xf32>
    %c24_72 = arith.constant 24 : index
    %c32_73 = arith.constant 32 : index
    %117 = vector.load %arg13[%c24_72, %c32_73] : memref<40x64xf32, #tpu.memory_space<vmem>>, vector<8x32xf32>
    tpu.vector_store %arg13[%c24_72, %c32_73], %116 {strides = array<i32>} : memref<40x64xf32, #tpu.memory_space<vmem>>, vector<8x32xf32>,
    %c0_74 = arith.constant 0 : index
    %c40 = arith.constant 40 : index
    %118 = vector.load %arg12[%c0_74, %c40] : memref<8x72xf32, #tpu.memory_space<vmem>>, vector<8x32xf32>
    %c32_75 = arith.constant 32 : index
    %c32_76 = arith.constant 32 : index
    %119 = vector.load %arg13[%c32_75, %c32_76] : memref<40x64xf32, #tpu.memory_space<vmem>>, vector<8x32xf32>
    tpu.vector_store %arg13[%c32_75, %c32_76], %118 {strides = array<i32>} : memref<40x64xf32, #tpu.memory_space<vmem>>, vector<8x32xf32>,
    %c0_77 = arith.constant 0 : index
    %c0_78 = arith.constant 0 : index
    %120 = vector.load %arg3[%c0_77, %c0_78] : memref<16x40xf32, #tpu.memory_space<vmem>>, vector<16x40xf32>
    %c0_79 = arith.constant 0 : index
    %c0_80 = arith.constant 0 : index
    %121 = vector.load %arg13[%c0_79, %c0_80] : memref<40x64xf32, #tpu.memory_space<vmem>>, vector<40x64xf32>
    %cst_81 = arith.constant dense<0.000000e+00> : vector<16x64xf32>
    %122 = tpu.matmul %120, %121, %cst_81 {dimension_numbers = #tpu.dot_dimension_numbers<[1], [0], [0], [1], [0, 0, 1, 1], [], []>} : vector<16x40xf32>, vector<40x64xf32>, vector<16x64xf32> -> vector<16x64xf32>
    %c0_82 = arith.constant 0 : index
    %c0_83 = arith.constant 0 : index
    %123 = vector.load %arg4[%c0_82, %c0_83] : memref<16x1xf32, #tpu.memory_space<vmem>>, vector<16x1xf32>
    %124 = vector.broadcast %123 : vector<16x1xf32> to vector<16x64xf32>
    %125 = arith.addf %122, %124 : vector<16x64xf32>
    %cst_84 = arith.constant 0.000000e+00 : f32
    %126 = vector.broadcast %cst_84 : f32 to vector<16x64xf32>
    %127 = arith.maximumf %125, %126 : vector<16x64xf32>
    %c0_85 = arith.constant 0 : index
    %c0_86 = arith.constant 0 : index
    %128 = vector.load %arg14[%c0_85, %c0_86] : memref<16x65xf32, #tpu.memory_space<vmem>>, vector<16x64xf32>
    tpu.vector_store %arg14[%c0_85, %c0_86], %127 {strides = array<i32>} : memref<16x65xf32, #tpu.memory_space<vmem>>, vector<16x64xf32>,
    %c0_87 = arith.constant 0 : index
    %c0_88 = arith.constant 0 : index
    %129 = vector.load %arg14[%c0_87, %c0_88] : memref<16x65xf32, #tpu.memory_space<vmem>>, vector<16x64xf32>
    %c0_89 = arith.constant 0 : index
    %c1_90 = arith.constant 1 : index
    %130 = vector.load %arg14[%c0_89, %c1_90] : memref<16x65xf32, #tpu.memory_space<vmem>>, vector<16x64xf32>
    %131 = arith.maximumf %129, %130 : vector<16x64xf32>
    %132 = tpu.iota {dimensions = array<i32: 0>} : vector<64x44xi32>
    %133 = tpu.iota {dimensions = array<i32: 1>} : vector<64x44xi32>
    %false_91 = arith.constant false
    %134 = vector.broadcast %false_91 : i1 to vector<64x44xi1>
    %c3_i32 = arith.constant 3 : i32
    %135 = vector.broadcast %c3_i32 : i32 to vector<64x44xi32>
    %136 = arith.subi %133, %135 : vector<64x44xi32>
    %c0_i32_92 = arith.constant 0 : i32
    %137 = vector.broadcast %c0_i32_92 : i32 to vector<64x44xi32>
    %138 = arith.cmpi sge, %136, %137 : vector<64x44xi32>
    %c16_i32 = arith.constant 16 : i32
    %139 = vector.broadcast %c16_i32 : i32 to vector<64x44xi32>
    %140 = arith.cmpi slt, %136, %139 : vector<64x44xi32>
    %141 = arith.andi %138, %140 : vector<64x44xi1>
    %c2_i32_93 = arith.constant 2 : i32
    %142 = vector.broadcast %c2_i32_93 : i32 to vector<64x44xi32>
    %143 = arith.muli %142, %136 : vector<64x44xi32>
    %c0_i32_94 = arith.constant 0 : i32
    %144 = vector.broadcast %c0_i32_94 : i32 to vector<64x44xi32>
    %145 = arith.addi %144, %143 : vector<64x44xi32>
    %146 = arith.cmpi eq, %132, %145 : vector<64x44xi32>
    %147 = arith.andi %141, %146 : vector<64x44xi1>
    %148 = arith.ori %134, %147 : vector<64x44xi1>
    %c25_i32 = arith.constant 25 : i32
    %149 = vector.broadcast %c25_i32 : i32 to vector<64x44xi32>
    %150 = arith.subi %133, %149 : vector<64x44xi32>
    %c0_i32_95 = arith.constant 0 : i32
    %151 = vector.broadcast %c0_i32_95 : i32 to vector<64x44xi32>
    %152 = arith.cmpi sge, %150, %151 : vector<64x44xi32>
    %c16_i32_96 = arith.constant 16 : i32
    %153 = vector.broadcast %c16_i32_96 : i32 to vector<64x44xi32>
    %154 = arith.cmpi slt, %150, %153 : vector<64x44xi32>
    %155 = arith.andi %152, %154 : vector<64x44xi1>
    %c2_i32_97 = arith.constant 2 : i32
    %156 = vector.broadcast %c2_i32_97 : i32 to vector<64x44xi32>
    %157 = arith.muli %156, %150 : vector<64x44xi32>
    %c32_i32_98 = arith.constant 32 : i32
    %158 = vector.broadcast %c32_i32_98 : i32 to vector<64x44xi32>
    %159 = arith.addi %158, %157 : vector<64x44xi32>
    %160 = arith.cmpi eq, %132, %159 : vector<64x44xi32>
    %161 = arith.andi %155, %160 : vector<64x44xi1>
    %162 = arith.ori %148, %161 : vector<64x44xi1>
    %163 = arith.extui %162 : vector<64x44xi1> to vector<64x44xi32>
    %164 = arith.sitofp %163 : vector<64x44xi32> to vector<64x44xf32>
    %cst_99 = arith.constant dense<0.000000e+00> : vector<16x44xf32>
    %165 = tpu.matmul %131, %164, %cst_99 {dimension_numbers = #tpu.dot_dimension_numbers<[1], [0], [0], [1], [0, 0, 1, 1], [], []>} : vector<16x64xf32>, vector<64x44xf32>, vector<16x44xf32> -> vector<16x44xf32>
    %c0_100 = arith.constant 0 : index
    %c0_101 = arith.constant 0 : index
    %166 = vector.load %arg15[%c0_100, %c0_101] : memref<16x44xf32, #tpu.memory_space<vmem>>, vector<16x44xf32>
    tpu.vector_store %arg15[%c0_100, %c0_101], %165 {strides = array<i32>} : memref<16x44xf32, #tpu.memory_space<vmem>>, vector<16x44xf32>,
    %c0_102 = arith.constant 0 : index
    %c0_103 = arith.constant 0 : index
    %167 = vector.load %arg15[%c0_102, %c0_103] : memref<16x44xf32, #tpu.memory_space<vmem>>, vector<16x16xf32>
    %c0_104 = arith.constant 0 : index
    %c0_105 = arith.constant 0 : index
    %168 = vector.load %arg16[%c0_104, %c0_105] : memref<112x32xf32, #tpu.memory_space<vmem>>, vector<16x16xf32>
    tpu.vector_store %arg16[%c0_104, %c0_105], %167 {strides = array<i32>} : memref<112x32xf32, #tpu.memory_space<vmem>>, vector<16x16xf32>,
    %c0_106 = arith.constant 0 : index
    %c1_107 = arith.constant 1 : index
    %169 = vector.load %arg15[%c0_106, %c1_107] : memref<16x44xf32, #tpu.memory_space<vmem>>, vector<16x16xf32>
    %c16_108 = arith.constant 16 : index
    %c0_109 = arith.constant 0 : index
    %170 = vector.load %arg16[%c16_108, %c0_109] : memref<112x32xf32, #tpu.memory_space<vmem>>, vector<16x16xf32>
    tpu.vector_store %arg16[%c16_108, %c0_109], %169 {strides = array<i32>} : memref<112x32xf32, #tpu.memory_space<vmem>>, vector<16x16xf32>,
    %c0_110 = arith.constant 0 : index
    %c2_111 = arith.constant 2 : index
    %171 = vector.load %arg15[%c0_110, %c2_111] : memref<16x44xf32, #tpu.memory_space<vmem>>, vector<16x16xf32>
    %c32_112 = arith.constant 32 : index
    %c0_113 = arith.constant 0 : index
    %172 = vector.load %arg16[%c32_112, %c0_113] : memref<112x32xf32, #tpu.memory_space<vmem>>, vector<16x16xf32>
    tpu.vector_store %arg16[%c32_112, %c0_113], %171 {strides = array<i32>} : memref<112x32xf32, #tpu.memory_space<vmem>>, vector<16x16xf32>,
    %c0_114 = arith.constant 0 : index
    %c3_115 = arith.constant 3 : index
    %173 = vector.load %arg15[%c0_114, %c3_115] : memref<16x44xf32, #tpu.memory_space<vmem>>, vector<16x16xf32>
    %c48 = arith.constant 48 : index
    %c0_116 = arith.constant 0 : index
    %174 = vector.load %arg16[%c48, %c0_116] : memref<112x32xf32, #tpu.memory_space<vmem>>, vector<16x16xf32>
    tpu.vector_store %arg16[%c48, %c0_116], %173 {strides = array<i32>} : memref<112x32xf32, #tpu.memory_space<vmem>>, vector<16x16xf32>,
    %c0_117 = arith.constant 0 : index
    %c4_118 = arith.constant 4 : index
    %175 = vector.load %arg15[%c0_117, %c4_118] : memref<16x44xf32, #tpu.memory_space<vmem>>, vector<16x16xf32>
    %c64_119 = arith.constant 64 : index
    %c0_120 = arith.constant 0 : index
    %176 = vector.load %arg16[%c64_119, %c0_120] : memref<112x32xf32, #tpu.memory_space<vmem>>, vector<16x16xf32>
    tpu.vector_store %arg16[%c64_119, %c0_120], %175 {strides = array<i32>} : memref<112x32xf32, #tpu.memory_space<vmem>>, vector<16x16xf32>,
    %c0_121 = arith.constant 0 : index
    %c5 = arith.constant 5 : index
    %177 = vector.load %arg15[%c0_121, %c5] : memref<16x44xf32, #tpu.memory_space<vmem>>, vector<16x16xf32>
    %c80 = arith.constant 80 : index
    %c0_122 = arith.constant 0 : index
    %178 = vector.load %arg16[%c80, %c0_122] : memref<112x32xf32, #tpu.memory_space<vmem>>, vector<16x16xf32>
    tpu.vector_store %arg16[%c80, %c0_122], %177 {strides = array<i32>} : memref<112x32xf32, #tpu.memory_space<vmem>>, vector<16x16xf32>,
    %c0_123 = arith.constant 0 : index
    %c6 = arith.constant 6 : index
    %179 = vector.load %arg15[%c0_123, %c6] : memref<16x44xf32, #tpu.memory_space<vmem>>, vector<16x16xf32>
    %c96 = arith.constant 96 : index
    %c0_124 = arith.constant 0 : index
    %180 = vector.load %arg16[%c96, %c0_124] : memref<112x32xf32, #tpu.memory_space<vmem>>, vector<16x16xf32>
    tpu.vector_store %arg16[%c96, %c0_124], %179 {strides = array<i32>} : memref<112x32xf32, #tpu.memory_space<vmem>>, vector<16x16xf32>,
    %c0_125 = arith.constant 0 : index
    %c22 = arith.constant 22 : index
    %181 = vector.load %arg15[%c0_125, %c22] : memref<16x44xf32, #tpu.memory_space<vmem>>, vector<16x16xf32>
    %c0_126 = arith.constant 0 : index
    %c16_127 = arith.constant 16 : index
    %182 = vector.load %arg16[%c0_126, %c16_127] : memref<112x32xf32, #tpu.memory_space<vmem>>, vector<16x16xf32>
    tpu.vector_store %arg16[%c0_126, %c16_127], %181 {strides = array<i32>} : memref<112x32xf32, #tpu.memory_space<vmem>>, vector<16x16xf32>,
    %c0_128 = arith.constant 0 : index
    %c23 = arith.constant 23 : index
    %183 = vector.load %arg15[%c0_128, %c23] : memref<16x44xf32, #tpu.memory_space<vmem>>, vector<16x16xf32>
    %c16_129 = arith.constant 16 : index
    %c16_130 = arith.constant 16 : index
    %184 = vector.load %arg16[%c16_129, %c16_130] : memref<112x32xf32, #tpu.memory_space<vmem>>, vector<16x16xf32>
    tpu.vector_store %arg16[%c16_129, %c16_130], %183 {strides = array<i32>} : memref<112x32xf32, #tpu.memory_space<vmem>>, vector<16x16xf32>,
    %c0_131 = arith.constant 0 : index
    %c24_132 = arith.constant 24 : index
    %185 = vector.load %arg15[%c0_131, %c24_132] : memref<16x44xf32, #tpu.memory_space<vmem>>, vector<16x16xf32>
    %c32_133 = arith.constant 32 : index
    %c16_134 = arith.constant 16 : index
    %186 = vector.load %arg16[%c32_133, %c16_134] : memref<112x32xf32, #tpu.memory_space<vmem>>, vector<16x16xf32>
    tpu.vector_store %arg16[%c32_133, %c16_134], %185 {strides = array<i32>} : memref<112x32xf32, #tpu.memory_space<vmem>>, vector<16x16xf32>,
    %c0_135 = arith.constant 0 : index
    %c25 = arith.constant 25 : index
    %187 = vector.load %arg15[%c0_135, %c25] : memref<16x44xf32, #tpu.memory_space<vmem>>, vector<16x16xf32>
    %c48_136 = arith.constant 48 : index
    %c16_137 = arith.constant 16 : index
    %188 = vector.load %arg16[%c48_136, %c16_137] : memref<112x32xf32, #tpu.memory_space<vmem>>, vector<16x16xf32>
    tpu.vector_store %arg16[%c48_136, %c16_137], %187 {strides = array<i32>} : memref<112x32xf32, #tpu.memory_space<vmem>>, vector<16x16xf32>,
    %c0_138 = arith.constant 0 : index
    %c26 = arith.constant 26 : index
    %189 = vector.load %arg15[%c0_138, %c26] : memref<16x44xf32, #tpu.memory_space<vmem>>, vector<16x16xf32>
    %c64_139 = arith.constant 64 : index
    %c16_140 = arith.constant 16 : index
    %190 = vector.load %arg16[%c64_139, %c16_140] : memref<112x32xf32, #tpu.memory_space<vmem>>, vector<16x16xf32>
    tpu.vector_store %arg16[%c64_139, %c16_140], %189 {strides = array<i32>} : memref<112x32xf32, #tpu.memory_space<vmem>>, vector<16x16xf32>,
    %c0_141 = arith.constant 0 : index
    %c27 = arith.constant 27 : index
    %191 = vector.load %arg15[%c0_141, %c27] : memref<16x44xf32, #tpu.memory_space<vmem>>, vector<16x16xf32>
    %c80_142 = arith.constant 80 : index
    %c16_143 = arith.constant 16 : index
    %192 = vector.load %arg16[%c80_142, %c16_143] : memref<112x32xf32, #tpu.memory_space<vmem>>, vector<16x16xf32>
    tpu.vector_store %arg16[%c80_142, %c16_143], %191 {strides = array<i32>} : memref<112x32xf32, #tpu.memory_space<vmem>>, vector<16x16xf32>,
    %c0_144 = arith.constant 0 : index
    %c28 = arith.constant 28 : index
    %193 = vector.load %arg15[%c0_144, %c28] : memref<16x44xf32, #tpu.memory_space<vmem>>, vector<16x16xf32>
    %c96_145 = arith.constant 96 : index
    %c16_146 = arith.constant 16 : index
    %194 = vector.load %arg16[%c96_145, %c16_146] : memref<112x32xf32, #tpu.memory_space<vmem>>, vector<16x16xf32>
    tpu.vector_store %arg16[%c96_145, %c16_146], %193 {strides = array<i32>} : memref<112x32xf32, #tpu.memory_space<vmem>>, vector<16x16xf32>,
    %c0_147 = arith.constant 0 : index
    %c0_148 = arith.constant 0 : index
    %195 = vector.load %arg5[%c0_147, %c0_148] : memref<32x112xf32, #tpu.memory_space<vmem>>, vector<32x112xf32>
    %c0_149 = arith.constant 0 : index
    %c0_150 = arith.constant 0 : index
    %196 = vector.load %arg16[%c0_149, %c0_150] : memref<112x32xf32, #tpu.memory_space<vmem>>, vector<112x32xf32>
    %cst_151 = arith.constant dense<0.000000e+00> : vector<32x32xf32>
    %197 = tpu.matmul %195, %196, %cst_151 {dimension_numbers = #tpu.dot_dimension_numbers<[1], [0], [0], [1], [0, 0, 1, 1], [], []>} : vector<32x112xf32>, vector<112x32xf32>, vector<32x32xf32> -> vector<32x32xf32>
    %c0_152 = arith.constant 0 : index
    %c0_153 = arith.constant 0 : index
    %198 = vector.load %arg6[%c0_152, %c0_153] : memref<32x1xf32, #tpu.memory_space<vmem>>, vector<32x1xf32>
    %199 = vector.broadcast %198 : vector<32x1xf32> to vector<32x32xf32>
    %200 = arith.addf %197, %199 : vector<32x32xf32>
    %cst_154 = arith.constant 0.000000e+00 : f32
    %201 = vector.broadcast %cst_154 : f32 to vector<32x32xf32>
    %202 = arith.maximumf %200, %201 : vector<32x32xf32>
    %c0_155 = arith.constant 0 : index
    %c0_156 = arith.constant 0 : index
    %203 = vector.load %arg17[%c0_155, %c0_156] : memref<32x33xf32, #tpu.memory_space<vmem>>, vector<32x32xf32>
    tpu.vector_store %arg17[%c0_155, %c0_156], %202 {strides = array<i32>} : memref<32x33xf32, #tpu.memory_space<vmem>>, vector<32x32xf32>,
    %c0_157 = arith.constant 0 : index
    %c0_158 = arith.constant 0 : index
    %204 = vector.load %arg17[%c0_157, %c0_158] : memref<32x33xf32, #tpu.memory_space<vmem>>, vector<32x32xf32>
    %c0_159 = arith.constant 0 : index
    %c1_160 = arith.constant 1 : index
    %205 = vector.load %arg17[%c0_159, %c1_160] : memref<32x33xf32, #tpu.memory_space<vmem>>, vector<32x32xf32>
    %206 = arith.maximumf %204, %205 : vector<32x32xf32>
    %207 = tpu.iota {dimensions = array<i32: 0>} : vector<32x16xi32>
    %208 = tpu.iota {dimensions = array<i32: 1>} : vector<32x16xi32>
    %false_161 = arith.constant false
    %209 = vector.broadcast %false_161 : i1 to vector<32x16xi1>
    %c0_i32_162 = arith.constant 0 : i32
    %210 = vector.broadcast %c0_i32_162 : i32 to vector<32x16xi32>
    %211 = arith.subi %208, %210 : vector<32x16xi32>
    %c0_i32_163 = arith.constant 0 : i32
    %212 = vector.broadcast %c0_i32_163 : i32 to vector<32x16xi32>
    %213 = arith.cmpi sge, %211, %212 : vector<32x16xi32>
    %c8_i32 = arith.constant 8 : i32
    %214 = vector.broadcast %c8_i32 : i32 to vector<32x16xi32>
    %215 = arith.cmpi slt, %211, %214 : vector<32x16xi32>
    %216 = arith.andi %213, %215 : vector<32x16xi1>
    %c2_i32_164 = arith.constant 2 : i32
    %217 = vector.broadcast %c2_i32_164 : i32 to vector<32x16xi32>
    %218 = arith.muli %217, %211 : vector<32x16xi32>
    %c0_i32_165 = arith.constant 0 : i32
    %219 = vector.broadcast %c0_i32_165 : i32 to vector<32x16xi32>
    %220 = arith.addi %219, %218 : vector<32x16xi32>
    %221 = arith.cmpi eq, %207, %220 : vector<32x16xi32>
    %222 = arith.andi %216, %221 : vector<32x16xi1>
    %223 = arith.ori %209, %222 : vector<32x16xi1>
    %c8_i32_166 = arith.constant 8 : i32
    %224 = vector.broadcast %c8_i32_166 : i32 to vector<32x16xi32>
    %225 = arith.subi %208, %224 : vector<32x16xi32>
    %c0_i32_167 = arith.constant 0 : i32
    %226 = vector.broadcast %c0_i32_167 : i32 to vector<32x16xi32>
    %227 = arith.cmpi sge, %225, %226 : vector<32x16xi32>
    %c8_i32_168 = arith.constant 8 : i32
    %228 = vector.broadcast %c8_i32_168 : i32 to vector<32x16xi32>
    %229 = arith.cmpi slt, %225, %228 : vector<32x16xi32>
    %230 = arith.andi %227, %229 : vector<32x16xi1>
    %c2_i32_169 = arith.constant 2 : i32
    %231 = vector.broadcast %c2_i32_169 : i32 to vector<32x16xi32>
    %232 = arith.muli %231, %225 : vector<32x16xi32>
    %c16_i32_170 = arith.constant 16 : i32
    %233 = vector.broadcast %c16_i32_170 : i32 to vector<32x16xi32>
    %234 = arith.addi %233, %232 : vector<32x16xi32>
    %235 = arith.cmpi eq, %207, %234 : vector<32x16xi32>
    %236 = arith.andi %230, %235 : vector<32x16xi1>
    %237 = arith.ori %223, %236 : vector<32x16xi1>
    %238 = arith.extui %237 : vector<32x16xi1> to vector<32x16xi32>
    %239 = arith.sitofp %238 : vector<32x16xi32> to vector<32x16xf32>
    %cst_171 = arith.constant dense<0.000000e+00> : vector<32x16xf32>
    %240 = tpu.matmul %206, %239, %cst_171 {dimension_numbers = #tpu.dot_dimension_numbers<[1], [0], [0], [1], [0, 0, 1, 1], [], []>} : vector<32x32xf32>, vector<32x16xf32>, vector<32x16xf32> -> vector<32x16xf32>
    %241 = tpu.iota {dimensions = array<i32: 0>} : vector<16x2xi32>
    %242 = tpu.iota {dimensions = array<i32: 1>} : vector<16x2xi32>
    %c8_i32_172 = arith.constant 8 : i32
    %243 = vector.broadcast %c8_i32_172 : i32 to vector<16x2xi32>
    %244 = arith.muli %242, %243 : vector<16x2xi32>
    %245 = arith.subi %241, %244 : vector<16x2xi32>
    %c0_i32_173 = arith.constant 0 : i32
    %246 = vector.broadcast %c0_i32_173 : i32 to vector<16x2xi32>
    %247 = arith.cmpi sge, %245, %246 : vector<16x2xi32>
    %c8_i32_174 = arith.constant 8 : i32
    %248 = vector.broadcast %c8_i32_174 : i32 to vector<16x2xi32>
    %249 = arith.cmpi slt, %245, %248 : vector<16x2xi32>
    %250 = arith.andi %247, %249 : vector<16x2xi1>
    %cst_175 = arith.constant 1.250000e-01 : f32
    %cst_176 = arith.constant 0.000000e+00 : f32
    %251 = vector.broadcast %cst_175 : f32 to vector<16x2xf32>
    %252 = vector.broadcast %cst_176 : f32 to vector<16x2xf32>
    %253 = arith.select %250, %251, %252 : vector<16x2xi1>, vector<16x2xf32>
    %cst_177 = arith.constant dense<0.000000e+00> : vector<32x2xf32>
    %254 = tpu.matmul %240, %253, %cst_177 {dimension_numbers = #tpu.dot_dimension_numbers<[1], [0], [0], [1], [0, 0, 1, 1], [], []>} : vector<32x16xf32>, vector<16x2xf32>, vector<32x2xf32> -> vector<32x2xf32>
    %c0_178 = arith.constant 0 : index
    %c0_179 = arith.constant 0 : index
    %255 = vector.load %arg7[%c0_178, %c0_179] : memref<16x32xf32, #tpu.memory_space<vmem>>, vector<16x32xf32>
    %cst_180 = arith.constant dense<0.000000e+00> : vector<16x2xf32>
    %256 = tpu.matmul %255, %254, %cst_180 {dimension_numbers = #tpu.dot_dimension_numbers<[1], [0], [0], [1], [0, 0, 1, 1], [], []>} : vector<16x32xf32>, vector<32x2xf32>, vector<16x2xf32> -> vector<16x2xf32>
    %c0_181 = arith.constant 0 : index
    %c0_182 = arith.constant 0 : index
    %257 = vector.load %arg8[%c0_181, %c0_182] : memref<16x1xf32, #tpu.memory_space<vmem>>, vector<16x1xf32>
    %258 = vector.broadcast %257 : vector<16x1xf32> to vector<16x2xf32>
    %259 = arith.addf %256, %258 : vector<16x2xf32>
    %c0_183 = arith.constant 0 : index
    %c0_184 = arith.constant 0 : index
    %260 = vector.load %arg9[%c0_183, %c0_184] : memref<16x2xf32, #tpu.memory_space<vmem>>, vector<16x2xf32>
    tpu.vector_store %arg9[%c0_183, %c0_184], %259 {strides = array<i32>} : memref<16x2xf32, #tpu.memory_space<vmem>>, vector<16x2xf32>,
    return
  }
}

</mosaic_0001>

<bundles_post_ra>
// kernel: cnn_feature_extractor.1
= control target key start
LH: loop header
LB: loop body
LE: loop exit
PB: predicated region body
PF: predicated region fallthrough
CT: control target
= control target key end

     0   :  { %v1819_v0 = vmov 1   ;;  %v1820_v3 = vmov 0   ;;  %v32_v4 = vlaneseq  ;;  %s1821_s13 = smov 3   ;;  %v1822_v5 = vmov 0.0   ;;  %s1830_s18 = smov 124   ;;  %s2400_s1 = inlined_call_operand.vmem [shape: f32[8,3], index: 1, kind: input, shape index: {}]   ;;  %s2401_s0 = inlined_call_operand.vmem [shape: f32[1,128], index: 0, kind: input, shape index: {}]   ;;  %s2402_s2 = inlined_call_operand.vmem [shape: f32[8,1], index: 2, kind: input, shape index: {}]   ;;  %s2403_s4 = inlined_call_operand.vmem [shape: f32[16,1], index: 4, kind: input, shape index: {}]   ;;  %s2404_s3 = inlined_call_operand.vmem [shape: f32[16,40], index: 3, kind: input, shape index: {}]   ;;  %s2405_s6 = inlined_call_operand.vmem [shape: f32[32,1], index: 6, kind: input, shape index: {}]   ;;  %s2406_s5 = inlined_call_operand.vmem [shape: f32[32,112], index: 5, kind: input, shape index: {}]   ;;  %s2407_s8 = inlined_call_operand.vmem [shape: f32[16,1], index: 8, kind: input, shape index: {}]   ;;  %s2408_s7 = inlined_call_operand.vmem [shape: f32[16,32], index: 7, kind: input, shape index: {}]   ;;  %s2409_s9 = inlined_call_operand.vmem [shape: f32[16,2], index: 9, kind: output, shape index: {}]  }
   0x1   :  { %1810 = vset.pattern.permute.xlu1 %v1819_v0  ;;  %v48_v1 = vld [vmem:[%s2400_s1] sm:$0xff]  ;;  %1812 = vset.pattern.permute.xlu0 %v1820_v3  ;;  %37 = vst [vmem:[#allocation3] sm:$0xff] %v1822_v5  ;;  %v1823_v7 = vmov 2   ;;  %s1824_s1 = smov 1   ;;  %vm64_vm5 = vcmask 23552   ;;  %vm2411_vm8 = vcmask 1039360  }
   0x2   :  { %v59_v2 = vld [vmem:[%s2401_s0] sm:$0x1]  ;;  %86 = vperm.xlu1 %1810, %v48_v1   ;;  %vm34_vm0 = vcmp.lt.s32.totalorder %v32_v4, 132  ;;  %vm55_vm1 = vcmp.ge.s32.totalorder %v32_v4, 1  ;;  %vm56_vm2 = vcmp.lt.s32.totalorder %v32_v4, 65  ;;  %vm67_vm3 = vcmp.ge.s32.totalorder %v32_v4, 67 }
   0x3   :  { %61 = vrot.lane.b32.xlu0 %v59_v2, %s1821_s13  ;;  %v50_v6 = vld [vmem:[%s2401_s0] sm:$0x1]  ;;  %36 = vst.msk [vmem:[#allocation2] sm:$0x3] %vm34_vm0, %v1822_v5  ;;  %vm68_vm4 = vcmp.lt.s32.totalorder %v32_v4, 131  ;;  %vm57_vm6 = vmand %vm55_vm1, %vm56_vm2  ;;  %v1911_v13 = vshrl.u32 %v32_v4, 7 }
   0x4   :  { %v49_v8 = vld [vmem:[%s2402_s2] sm:$0xff]  ;;  %vm69_vm7 = vmand %vm67_vm3, %vm68_vm4  ;;  %s1825_s0 = smov 127   ;;  %s1826_s2 = smov 126   ;;  %vm38_vm9 = vcmask 7168   ;;  %vm2412_vm10 = vcmask 1031168   ;;  %v1925_v42 = vand.u32 127, %v32_v4 }
   0x5   :  { %v118_v14 = vsub.s32 0, %v1911_v13  ;;  %v122_v15 = vsub.s32 1, %v1911_v13  ;;  %39 = vst.msk [vmem:[#allocation3 + $0x8] sm:$0xff] %vm38_vm9, %v1822_v5  ;;  %v1928_v51 = vadd.s32 8, %v1911_v13  ;;  %v1827_v54 = vmov 0.0|0.0   ;;  %s1831_s19 = smov 123  }
   0x6   :  { %1811 = vset.pattern.permute.xlu1 %v1823_v7  ;;  %v1403_v52 = vadd.s32 4294967294, %v1925_v42  ;;  %1692 = vmatprep.subr.bf16.mxu0 %v1827_v54  ;;  %v1404_v55 = vadd.s32 4294967258, %v1925_v42  ;;  %v1935_v56 = vadd.s32 16, %v1911_v13  ;;  %vm2410_vm0 = vcmask 523264   ;;  %s1832_s20 = smov 122   ;;  %s1833_s21 = smov 125  }
   0x7   :  { %52 = vrot.lane.b32.xlu0 %v50_v6, %s1824_s1  ;;  %96 = vperm.xlu1 %1811, %v48_v1   ;;  %v1828_v4 = vmov 1.0|1.0   ;;  %v1997_v6 = vadd.s32 40, %v1911_v13  ;;  %v2018_v7 = vadd.s32 48, %v1911_v13  ;;  %s1834_s22 = smov 121   ;;  %s1835_s27 = smov 120  }
   0x8   :  { %vm203_vm11 = vcmp.ge.s32.totalorder %v1403_v52, 0  ;;  %vm204_vm12 = vcmp.lt.s32.totalorder %v1403_v52, 32  ;;  %v1938_v57 = vmul.u32 2, %v1403_v52  ;;  %vm240_vm14 = vcmp.ge.s32.totalorder %v1404_v55, 0  ;;  %s1837_s10 = smov 118   ;;  %s1838_s11 = smov 117  }
   0x9   :  { %vm1940_vm13 = vmand %vm203_vm11, %vm204_vm12  ;;  %vm241_vm15 = vcmp.lt.s32.totalorder %v1404_v55, 32  ;;  %v243_v60 = vmul.u32 2, %v1404_v55  ;;  %v1439_v55 = vadd.s32 4294967293, %v1925_v42  ;;  %s1839_s12 = smov 116  }
   0xa   :  { %vm207_vm1 = vcmp.eq.s32.totalorder %v1911_v13, %v1938_v57  ;;  %vm208_vm2 = vcmp.eq.s32.totalorder %v1928_v51, %v1938_v57  ;;  %vm1948_vm3 = vmand %vm240_vm14, %vm241_vm15  ;;  %vm209_vm4 = vcmp.eq.s32.totalorder %v1935_v56, %v1938_v57 }
   0xb   :  { %74 = vperm.xlu0 %1812, %v48_v1   ;;  %1813 = vset.pattern.permute.xlu1 %v1820_v3  ;;  %v1960_v0 = vadd.s32 64, %v243_v60  ;;  %v1965_v1 = vadd.s32 24, %v1911_v13  ;;  %vm1974_vm11 = vmand %vm1940_vm13, %vm209_vm4  ;;  %v1991_v3 = vadd.s32 32, %v1911_v13 }
   0xc   :  { %107 = vperm.xlu1 %1813, %v49_v8   ;;  %v2024_v8 = vadd.s32 56, %v1911_v13 }
   0xd   :  { %vm246_vm9 = vcmp.eq.s32.totalorder %v1928_v51, %v1960_v0 }
   0xe   :  { %vm262_vm14 = vmand %vm1948_vm3, %vm246_vm9 }
  0x75   :  { %v62_v9 = vpop.permute.xlu0 %61 }
  0x76   :  { %v63_v10 = vrot.slane %v62_v9, 7 }
  0x78   :  { %v65_v12 = vsel %vm64_vm5, %v63_v10, %v62_v9  ;;  %vm1956_vm5 = vmand %vm1940_vm13, %vm207_vm1  ;;  %vm210_vm1 = vcmp.eq.s32.totalorder %v1965_v1, %v1938_v57  ;;  %v192_v9 = vadd.s32 64, %v1911_v13  ;;  %v193_v10 = vadd.s32 72, %v1911_v13 }
  0x79   :  { %v53_v11 = vpop.permute.xlu0 %52 }
  0x7a   :  { %58 = vst.msk [vmem:[#allocation2] sm:$0x1] %vm57_vm6, %v53_v11  ;;  %vm224_vm6 = vmand %vm1940_vm13, %vm208_vm2  ;;  %v194_v11 = vadd.s32 80, %v1911_v13 }
  0x7b   :  { %70 = vst.msk [vmem:[#allocation2] sm:$0x3] %vm69_vm7, %v65_v12  ;;  %vm245_vm7 = vcmp.eq.s32.totalorder %v1911_v13, %v1960_v0  ;;  %vm278_vm2 = vmor %vm224_vm6, %vm262_vm14  ;;  %v195_v12 = vadd.s32 88, %v1911_v13 }
  0x7c   :  { %vm261_vm12 = vmand %vm1948_vm3, %vm245_vm7 }
  0x7d   :  { %vm277_vm15 = vmor %vm1956_vm5, %vm261_vm12  ;;  %vm211_vm12 = vcmp.eq.s32.totalorder %v1991_v3, %v1938_v57 }
  0x7e   :  { %vm1693_vm4 = vmpackc.low %vm278_vm2, %vm277_vm15  ;;  %vm212_vm15 = vcmp.eq.s32.totalorder %v1997_v6, %v1938_v57  ;;  %vm249_vm2 = vcmp.eq.s32.totalorder %v1991_v3, %v1960_v0 }
  0x7f   :  { %1694 = vmatpush3.bf16.msk.msra.mxu0 %vm1693_vm4, %v1828_v4  ;;  %vm226_vm5 = vmand %vm1940_vm13, %vm210_vm1 }
  0x80   :  { %1695 = vmatprep.subr.bf16.mxu0 %v1827_v54  ;;  %vm265_vm4 = vmand %vm1948_vm3, %vm249_vm2  ;;  %vm252_vm2 = vcmp.eq.s32.totalorder %v2024_v8, %v1960_v0 }
  0x81   :  { %v87_v16 = vpop.permute.xlu1 %86 }
  0x82   :  { %v114_v17 = vld [vmem:[#allocation2] sm:$0x3] }
  0x83   :  { %v119_v18 = vrot.slane %v114_v17, %v118_v14  ;;  %v123_v19 = vrot.slane %v114_v17, %v122_v15  ;;  %v1402_v25 = vld [vmem:[#allocation2] ss:$0 sm:$0xff]  ;;  %v196_v14 = vadd.s32 96, %v1911_v13  ;;  %v197_v15 = vadd.s32 104, %v1911_v13 }
  0x84   :  { %v89_v26 = vmul.f32 %v1402_v25, %v87_v16  ;;  %v199_v17 = vadd.s32 120, %v1911_v13 }
  0x85   :  { %v130_v20 = vmul.f32 %v119_v18, %v87_v16  ;;  %v131_v21 = vmul.f32 %v123_v19, %v87_v16  ;;  %v198_v16 = vadd.s32 112, %v1911_v13 }
  0x86   :  { %v97_v22 = vpop.permute.xlu1 %96 }
  0x87   :  { %136 = vrot.lane.b32.xlu0 %v131_v21, %s1825_s0  ;;  %134 = vrot.lane.b32.xlu1 %v130_v20, %s1825_s0  ;;  %v144_v23 = vmul.f32 %v119_v18, %v97_v22  ;;  %v145_v24 = vmul.f32 %v123_v19, %v97_v22  ;;  %v99_v27 = vmul.f32 %v1402_v25, %v97_v22  ;;  %v173_v22 = vld [vmem:[#allocation3 + $0x8] sm:$0xff] }
  0x8a   :  { %v75_v29 = vpop.permute.xlu0 %74 }
  0x8b   :  { %150 = vrot.lane.b32.xlu0 %v145_v24, %s1826_s2  ;;  %148 = vrot.lane.b32.xlu1 %v144_v23, %s1826_s2  ;;  %v108_v28 = vpop.permute.xlu1 %107  ;;  %v127_v32 = vmul.f32 %v123_v19, %v75_v29  ;;  %v126_v34 = vmul.f32 %v119_v18, %v75_v29  ;;  %v83_v44 = vmul.f32 %v1402_v25, %v75_v29 }
  0x8f   :  { %101 = vrot.lane.b32.xlu0 %v99_v27, %s1826_s2  ;;  %91 = vrot.lane.b32.xlu1 %v89_v26, %s1825_s0 }
  0xf9   :  { %v135_v30 = vpop.permute.xlu1 %134  ;;  %v137_v31 = vpop.permute.xlu0 %136 }
  0xfa   :  { %v139_v33 = vsel %vm2411_vm8, %v135_v30, %v137_v31  ;;  %v143_v35 = vadd.f32 %v137_v31, %v127_v32  ;;  %vm248_vm8 = vcmp.eq.s32.totalorder %v1965_v1, %v1960_v0 }
  0xfb   :  { %v142_v36 = vadd.f32 %v139_v33, %v126_v34  ;;  %vm264_vm7 = vmand %vm1948_vm3, %vm248_vm8  ;;  %vm250_vm8 = vcmp.eq.s32.totalorder %v1997_v6, %v1960_v0  ;;  %v462_v33 = vld [vmem:[%s2403_s4] sm:$0xff] }
  0xfc   :  { %vm280_vm14 = vmor %vm226_vm5, %vm264_vm7  ;;  %vm213_vm7 = vcmp.eq.s32.totalorder %v2018_v7, %v1938_v57  ;;  %v455_v34 = vld [vmem:[%s2404_s3] sm:$0xff] }
  0xfd   :  { %v149_v37 = vpop.permute.xlu1 %148  ;;  %v151_v38 = vpop.permute.xlu0 %150  ;;  %vm266_vm5 = vmand %vm1948_vm3, %vm250_vm8 }
  0xfe   :  { %v153_v39 = vsel %vm2412_vm10, %v149_v37, %v151_v38  ;;  %v157_v40 = vadd.f32 %v151_v38, %v143_v35  ;;  %vm254_vm10 = vcmp.eq.s32.totalorder %v193_v10, %v1960_v0  ;;  %v463_v35 = vld [vmem:[%s2403_s4 + $0x8] sm:$0xff] }
  0xff   :  { %v156_v41 = vadd.f32 %v153_v39, %v142_v36 }
 0x100   :  { %v159_v43 = vadd.f32 %v157_v40, %v108_v28 }
 0x101   :  { %v92_v45 = vpop.permute.xlu1 %91  ;;  %v158_v46 = vadd.f32 %v156_v41, %v108_v28  ;;  %v102_v49 = vpop.permute.xlu0 %101 }
 0x102   :  { %v94_v47 = vadd.f32 %v92_v45, %v83_v44  ;;  %v161_v48 = vmax.f32 %v159_v43, 0.0 }
 0x103   :  { %v160_v50 = vmax.f32 %v158_v46, 0.0 }
 0x104   :  { %v104_v53 = vadd.f32 %v102_v49, %v94_v47  ;;  %166 = vrot.lane.b32.xlu0 %v161_v48, %s1826_s2 }
 0x105   :  { %164 = vrot.lane.b32.xlu1 %v160_v50, %s1826_s2 }
 0x106   :  { %v110_v58 = vadd.f32 %v108_v28, %v104_v53 }
 0x108   :  { %v111_v62 = vmax.f32 %v110_v58, 0.0  ;;  %v576_v58 = vmul.u32 2, %v1439_v55 }
 0x10a   :  { %113 = vst.msk [vmem:[#allocation3] sm:$0xff] %vm2410_vm0, %v111_v62  ;;  %vm247_vm0 = vcmp.eq.s32.totalorder %v1935_v56, %v1960_v0 }
 0x10b   :  { %vm263_vm6 = vmand %vm1948_vm3, %vm247_vm0 }
 0x10c   :  { %vm279_vm9 = vmor %vm1974_vm11, %vm263_vm6 }
 0x10d   :  { %vm1696_vm1 = vmpackc.low %vm280_vm14, %vm279_vm9 }
 0x10e   :  { %1697 = vmatpush3.bf16.msk.msra.mxu0 %vm1696_vm1, %v1828_v4  ;;  %vm227_vm0 = vmand %vm1940_vm13, %vm211_vm12  ;;  %vm214_vm12 = vcmp.eq.s32.totalorder %v2024_v8, %v1938_v57 }
 0x10f   :  { %1698 = vmatprep.subr.bf16.mxu0 %v1827_v54  ;;  %vm228_vm11 = vmand %vm1940_vm13, %vm212_vm15  ;;  %vm251_vm15 = vcmp.eq.s32.totalorder %v2018_v7, %v1960_v0 }
 0x110   :  { %vm281_vm6 = vmor %vm227_vm0, %vm265_vm4 }
 0x111   :  { %vm282_vm9 = vmor %vm228_vm11, %vm266_vm5  ;;  %vm215_vm5 = vcmp.eq.s32.totalorder %v192_v9, %v1938_v57 }
 0x112   :  { %vm1699_vm14 = vmpackc.low %vm282_vm9, %vm281_vm6 }
 0x113   :  { %1700 = vmatpush3.bf16.msk.msra.mxu0 %vm1699_vm14, %v1828_v4  ;;  %vm229_vm1 = vmand %vm1940_vm13, %vm213_vm7  ;;  %vm216_vm7 = vcmp.eq.s32.totalorder %v193_v10, %v1938_v57  ;;  %vm253_vm14 = vcmp.eq.s32.totalorder %v192_v9, %v1960_v0 }
 0x114   :  { %1701 = vmatprep.subr.bf16.mxu0 %v1827_v54  ;;  %vm230_vm0 = vmand %vm1940_vm13, %vm214_vm12 }
 0x115   :  { %vm267_vm8 = vmand %vm1948_vm3, %vm251_vm15 }
 0x116   :  { %vm268_vm11 = vmand %vm1948_vm3, %vm252_vm2 }
 0x117   :  { %vm283_vm4 = vmor %vm229_vm1, %vm267_vm8  ;;  %vm217_vm8 = vcmp.eq.s32.totalorder %v194_v11, %v1938_v57 }
 0x118   :  { %vm284_vm6 = vmor %vm230_vm0, %vm268_vm11 }
 0x119   :  { %vm1702_vm9 = vmpackc.low %vm284_vm6, %vm283_vm4  ;;  %vm218_vm4 = vcmp.eq.s32.totalorder %v195_v12, %v1938_v57  ;;  %vm255_vm6 = vcmp.eq.s32.totalorder %v194_v11, %v1960_v0 }
 0x11a   :  { %1703 = vmatpush3.bf16.msk.msra.mxu0 %vm1702_vm9, %v1828_v4  ;;  %vm231_vm12 = vmand %vm1940_vm13, %vm215_vm5  ;;  %vm256_vm9 = vcmp.eq.s32.totalorder %v195_v12, %v1960_v0 }
 0x11b   :  { %1704 = vmatprep.subr.bf16.mxu0 %v1827_v54  ;;  %vm232_vm15 = vmand %vm1940_vm13, %vm216_vm7 }
 0x11c   :  { %vm269_vm1 = vmand %vm1948_vm3, %vm253_vm14 }
 0x11d   :  { %vm270_vm2 = vmand %vm1948_vm3, %vm254_vm10 }
 0x11e   :  { %vm285_vm0 = vmor %vm231_vm12, %vm269_vm1  ;;  %vm219_vm1 = vcmp.eq.s32.totalorder %v196_v14, %v1938_v57 }
 0x11f   :  { %vm286_vm11 = vmor %vm232_vm15, %vm270_vm2 }
 0x120   :  { %vm1705_vm5 = vmpackc.low %vm286_vm11, %vm285_vm0  ;;  %vm220_vm0 = vcmp.eq.s32.totalorder %v197_v15, %v1938_v57  ;;  %vm257_vm11 = vcmp.eq.s32.totalorder %v196_v14, %v1960_v0 }
 0x121   :  { %1706 = vmatpush3.bf16.msk.msra.mxu0 %vm1705_vm5, %v1828_v4  ;;  %vm233_vm7 = vmand %vm1940_vm13, %vm217_vm8  ;;  %vm258_vm5 = vcmp.eq.s32.totalorder %v197_v15, %v1960_v0 }
 0x122   :  { %1707 = vmatprep.subr.bf16.mxu0 %v1827_v54  ;;  %vm234_vm10 = vmand %vm1940_vm13, %vm218_vm4 }
 0x123   :  { %vm271_vm14 = vmand %vm1948_vm3, %vm255_vm6 }
 0x124   :  { %vm272_vm12 = vmand %vm1948_vm3, %vm256_vm9 }
 0x125   :  { %vm287_vm15 = vmor %vm233_vm7, %vm271_vm14 }
 0x126   :  { %vm288_vm2 = vmor %vm234_vm10, %vm272_vm12 }
 0x127   :  { %vm1708_vm8 = vmpackc.low %vm288_vm2, %vm287_vm15  ;;  %vm221_vm15 = vcmp.eq.s32.totalorder %v198_v16, %v1938_v57  ;;  %vm259_vm2 = vcmp.eq.s32.totalorder %v198_v16, %v1960_v0 }
 0x128   :  { %1709 = vmatpush3.bf16.msk.msra.mxu0 %vm1708_vm8, %v1828_v4  ;;  %vm235_vm4 = vmand %vm1940_vm13, %vm219_vm1  ;;  %vm222_vm1 = vcmp.eq.s32.totalorder %v199_v17, %v1938_v57  ;;  %vm260_vm8 = vcmp.eq.s32.totalorder %v199_v17, %v1960_v0  ;;  %v1440_v57 = vadd.s32 4294967271, %v1925_v42 }
 0x129   :  { %1710 = vmatprep.subr.bf16.mxu0 %v1827_v54  ;;  %vm236_vm6 = vmand %vm1940_vm13, %vm220_vm0 }
 0x12a   :  { %vm273_vm7 = vmand %vm1948_vm3, %vm257_vm11  ;;  %vm170_vm11 = vcmask 1048064   ;;  %v597_v60 = vmul.u32 2, %v1440_v57 }
 0x12b   :  { %vm274_vm9 = vmand %vm1948_vm3, %vm258_vm5 }
 0x12c   :  { %vm289_vm10 = vmor %vm235_vm4, %vm273_vm7  ;;  %vm2424_vm7 = vcmask 1031168   ;;  %v598_v62 = vadd.s32 32, %v597_v60 }
 0x12d   :  { %vm290_vm14 = vmor %vm236_vm6, %vm274_vm9  ;;  %vm1829_vm6 = vmmov 0  }
 0x12e   :  { %vm1711_vm12 = vmpackc.low %vm290_vm14, %vm289_vm10  ;;  %1588 = vmatprep.mubr.msk.f32.mxu0 %vm1829_vm6, %v1822_v5  ;;  %vm595_vm6 = vcmp.lt.s32.totalorder %v1440_v57, 16 }
 0x12f   :  { %1712 = vmatpush3.bf16.msk.msra.mxu0 %vm1711_vm12, %v1828_v4  ;;  %vm2105_vm0 = vmand %vm1940_vm13, %vm221_vm15  ;;  %vm2413_vm15 = vcmask 261120  }
 0x130   :  { %1713 = vmatprep.subr.bf16.mxu0 %v1827_v54  ;;  %vm238_vm4 = vmand %vm1940_vm13, %vm222_vm1  ;;  %vm2425_vm13 = vcmask 1039360   ;;  %vm474_vm1 = vcmask 326656   ;;  %v456_v54 = vld [vmem:[%s2404_s3 + $0x8] sm:$0xff]  ;;  %s1836_s3 = smov 119  }
 0x131   :  { %vm275_vm5 = vmand %vm1948_vm3, %vm259_vm2  ;;  %1601 = vmatprep.mubr.msk.f32.mxu1 %vm474_vm1, %v455_v34  ;;  %vm40_vm2 = vcmask 531456  }
 0x132   :  { %vm276_vm9 = vmand %vm1948_vm3, %vm260_vm8  ;;  %vm395_vm3 = vcmask 588800   ;;  %42 = vst.msk [vmem:[#allocation6 + $0x8] sm:$0xff] %vm40_vm2, %v1822_v5  ;;  %vm573_vm8 = vcmp.ge.s32.totalorder %v1439_v55, 0 }
 0x133   :  { %vm291_vm10 = vmor %vm2105_vm0, %vm275_vm5  ;;  %41 = vst.msk [vmem:[#allocation6] sm:$0xff] %vm40_vm2, %v1822_v5  ;;  %vm429_vm0 = vcmask 523520  }
 0x134   :  { %vm292_vm14 = vmor %vm238_vm4, %vm276_vm9  ;;  %vm594_vm4 = vcmp.ge.s32.totalorder %v1440_v57, 0  ;;  %vm578_vm9 = vcmp.eq.s32.totalorder %v1928_v51, %v576_v58 }
 0x135   :  { %vm1714_vm12 = vmpackc.low %vm292_vm14, %vm291_vm10  ;;  %vm579_vm14 = vcmp.eq.s32.totalorder %v1935_v56, %v576_v58 }
 0x136   :  { %1715 = vmatpush3.bf16.msk.msra.mxu0 %vm1714_vm12, %v1828_v4  ;;  %vm2166_vm10 = vmand %vm594_vm4, %vm595_vm6  ;;  %vm580_vm4 = vcmp.eq.s32.totalorder %v1965_v1, %v576_v58 }
 0x176   :  { %v167_v19 = vpop.permute.xlu0 %166 }
 0x177   :  { %v165_v20 = vpop.permute.xlu1 %164 }
 0x178   :  { %v168_v21 = vsel %vm2424_vm7, %v165_v20, %v167_v19  ;;  %vm577_vm7 = vcmp.eq.s32.totalorder %v1911_v13, %v576_v58 }
 0x179   :  { %171 = vst.msk [vmem:[#allocation3] sm:$0xff] %vm170_vm11, %v168_v21  ;;  %vm574_vm11 = vcmp.lt.s32.totalorder %v1439_v55, 16 }
 0x17a   :  { %vm2160_vm5 = vmand %vm573_vm8, %vm574_vm11 }
 0x17b   :  { %vm585_vm12 = vmand %vm2160_vm5, %vm577_vm7  ;;  %vm601_vm7 = vcmp.eq.s32.totalorder %v1935_v56, %v598_v62 }
 0x17c   :  { %vm2179_vm2 = vmand %vm2160_vm5, %vm579_vm14 }
 0x17d   :  { %vm588_vm14 = vmand %vm2160_vm5, %vm580_vm4 }
 0x180   :  { %v172_v23 = vld [vmem:[#allocation3] sm:$0xff] }
 0x181   :  { %v1814_v24 = vpack.i.bf16 %v173_v22, %v172_v23 }
 0x183   :  { %1815 = vrot.lane.b32.xlu1 %v1814_v24, %s1825_s0  ;;  %v904_v24 = vld [vmem:[%s2405_s6 + $0x8] sm:$0xff] }
 0x1f5   :  { %v1816_v25 = vpop.permute.xlu1 %1815 }
 0x1f6   :  { %v1818_v26 = vunpack.i.h.bf16 %v1816_v25  ;;  %v1817_v27 = vunpack.i.l.bf16 %v1816_v25  ;;  %v903_v25 = vld [vmem:[%s2405_s6] sm:$0xff] }
 0x1f8   :  { %v180_v28 = vsel %vm2425_vm13, %v1817_v27, %v1818_v26  ;;  %vm586_vm13 = vmand %vm2160_vm5, %vm578_vm9  ;;  %v906_v26 = vld [vmem:[%s2405_s6 + $0x18] sm:$0xff]  ;;  %v905_v27 = vld [vmem:[%s2405_s6 + $0x10] sm:$0xff] }
 0x1f9   :  { %v182_v29 = vmax.f32 %v172_v23, %v180_v28  ;;  %v885_v23 = vld [vmem:[%s2406_s5] sm:$0xff] }
 0x1fb   :  { %1589 = vmatmul.mubr.f32.vlgmr.msra.gmra.mrb[0].mxu0 %v182_v29 }
 0x2ce   :  { %v391_v30 = vpop.f32.mrb[0].mxu0 }
 0x2cf   :  { %396 = vst.msk [vmem:[#allocation4] sm:$0xff] %vm395_vm3, %v391_v30  ;;  %v1590_v31 = vpop.f32.mrb[1].mxu0  ;;  %vm599_vm3 = vcmp.eq.s32.totalorder %v1911_v13, %v598_v62 }
 0x2d6   :  { %v424_v32 = vld [vmem:[#allocation4] sm:$0xff] }
 0x2d7   :  { %426 = vrot.lane.b32.xlu1 %v424_v32, %s1830_s18  ;;  %402 = vrot.lane.b32.xlu0 %v424_v32, %s1825_s0  ;;  %399 = vst.msk [vmem:[#allocation5] sm:$0xff] %vm2413_vm15, %v424_v32 }
 0x2db   :  { %408 = vrot.lane.b32.xlu1 %v424_v32, %s1826_s2  ;;  %433 = vrot.lane.b32.xlu0 %v424_v32, %s1831_s19 }
 0x2df   :  { %439 = vrot.lane.b32.xlu1 %v424_v32, %s1832_s20  ;;  %414 = vrot.lane.b32.xlu0 %v424_v32, %s1833_s21 }
 0x2e3   :  { %420 = vrot.lane.b32.xlu1 %v424_v32, %s1830_s18  ;;  %445 = vrot.lane.b32.xlu0 %v424_v32, %s1834_s22 }
 0x2e7   :  { %466 = vperm.xlu1 %1813, %v462_v33   ;;  %451 = vrot.lane.b32.xlu0 %v424_v32, %s1835_s27 }
 0x2eb   :  { %471 = vperm.xlu0 %1812, %v463_v35  }
 0x349   :  { %v427_v36 = vpop.permute.xlu1 %426  ;;  %v403_v37 = vpop.permute.xlu0 %402 }
 0x34a   :  { %430 = vst.msk [vmem:[#allocation5] sm:$0xff] %vm429_vm0, %v427_v36 }
 0x34b   :  { %405 = vst.msk [vmem:[#allocation5 + $0x8] sm:$0xff] %vm2413_vm15, %v403_v37 }
 0x34d   :  { %v409_v38 = vpop.permute.xlu1 %408  ;;  %v434_v39 = vpop.permute.xlu0 %433 }
 0x34e   :  { %411 = vst.msk [vmem:[#allocation5 + $0x10] sm:$0xff] %vm2413_vm15, %v409_v38 }
 0x34f   :  { %436 = vst.msk [vmem:[#allocation5 + $0x8] sm:$0xff] %vm429_vm0, %v434_v39 }
 0x351   :  { %v440_v40 = vpop.permute.xlu1 %439  ;;  %v415_v41 = vpop.permute.xlu0 %414  ;;  %v457_v45 = vld [vmem:[#allocation5] sm:$0xff] }
 0x352   :  { %442 = vst.msk [vmem:[#allocation5 + $0x10] sm:$0xff] %vm429_vm0, %v440_v40 }
 0x353   :  { %417 = vst.msk [vmem:[#allocation5 + $0x18] sm:$0xff] %vm2413_vm15, %v415_v41 }
 0x355   :  { %v421_v43 = vpop.permute.xlu1 %420  ;;  %v446_v44 = vpop.permute.xlu0 %445 }
 0x356   :  { %v458_v46 = vld [vmem:[#allocation5 + $0x8] sm:$0xff]  ;;  %423 = vst.msk [vmem:[#allocation5 + $0x20] sm:$0xff] %vm2413_vm15, %v421_v43  ;;  %vm602_vm15 = vcmp.eq.s32.totalorder %v1965_v1, %v598_v62 }
 0x357   :  { %448 = vst.msk [vmem:[#allocation5 + $0x18] sm:$0xff] %vm429_vm0, %v446_v44  ;;  %v1716_v47 = vpack.c.bf16 %v458_v46, %v457_v45 }
 0x359   :  { %1717 = vmatprep.subr.bf16.mxu1 %v1716_v47  ;;  %v452_v48 = vpop.permute.xlu0 %451  ;;  %v459_v49 = vld [vmem:[#allocation5 + $0x10] sm:$0xff] }
 0x35a   :  { %1719 = vmatpush3.bf16.msra.mxu1 %v1716_v47  ;;  %454 = vst.msk [vmem:[#allocation5 + $0x20] sm:$0xff] %vm429_vm0, %v452_v48  ;;  %vm607_vm0 = vmand %vm2166_vm10, %vm599_vm3 }
 0x35b   :  { %vm615_vm11 = vmor %vm585_vm12, %vm607_vm0 }
 0x35c   :  { %vm609_vm3 = vmand %vm2166_vm10, %vm601_vm7  ;;  %vm604_vm7 = vcmp.eq.s32.totalorder %v1997_v6, %v598_v62 }
 0x35d   :  { %vm610_vm12 = vmand %vm2166_vm10, %vm602_vm15 }
 0x35e   :  { %v460_v50 = vld [vmem:[#allocation5 + $0x18] sm:$0xff]  ;;  %vm618_vm0 = vmor %vm588_vm14, %vm610_vm12 }
 0x35f   :  { %v1720_v52 = vpack.c.bf16 %v460_v50, %v459_v49 }
 0x361   :  { %1721 = vmatprep.subr.bf16.mxu1 %v1720_v52  ;;  %v461_v53 = vld [vmem:[#allocation5 + $0x20] sm:$0xff] }
 0x362   :  { %1723 = vmatpush3.bf16.msra.mxu1 %v1720_v52 }
 0x363   :  { %1599 = vmatprep.subr.mxu1 %v461_v53 }
 0x366   :  { %1600 = vmatpush3.msra.mxu1 %v461_v53 }
 0x367   :  { %1602 = vmatmul.mubr.msk.f32.vlgmr.msra.gmra.mrb[0].mxu1 %vm474_vm1, %v456_v54  ;;  %vm600_vm1 = vcmp.eq.s32.totalorder %v1928_v51, %v598_v62 }
 0x368   :  { %vm608_vm8 = vmand %vm2166_vm10, %vm600_vm1  ;;  %vm581_vm1 = vcmp.eq.s32.totalorder %v1991_v3, %v576_v58 }
 0x369   :  { %vm616_vm6 = vmor %vm586_vm13, %vm608_vm8  ;;  %vm582_vm8 = vcmp.eq.s32.totalorder %v1997_v6, %v576_v58  ;;  %v467_v6 = vpop.permute.xlu1 %466 }
 0x36a   :  { %vm1724_vm9 = vmpackc.low %vm616_vm6, %vm615_vm11  ;;  %vm603_vm6 = vcmp.eq.s32.totalorder %v1991_v3, %v598_v62  ;;  %v472_v2 = vpop.permute.xlu0 %471 }
 0x36b   :  { %1725 = vmatprep.subr.msk.bf16.mxu1 %vm1724_vm9, %v1828_v4  ;;  %vm617_vm13 = vmor %vm2179_vm2, %vm609_vm3 }
 0x36c   :  { %1727 = vmatpush3.bf16.msk.msra.mxu1 %vm1724_vm9, %v1828_v4  ;;  %vm1728_vm11 = vmpackc.low %vm618_vm0, %vm617_vm13  ;;  %vm583_vm13 = vcmp.eq.s32.totalorder %v2018_v7, %v576_v58  ;;  %vm605_vm0 = vcmp.eq.s32.totalorder %v2018_v7, %v598_v62 }
 0x36d   :  { %1729 = vmatprep.subr.msk.bf16.mxu1 %vm1728_vm11, %v1828_v4  ;;  %vm589_vm4 = vmand %vm2160_vm5, %vm581_vm1  ;;  %vm584_vm1 = vcmp.eq.s32.totalorder %v2024_v8, %v576_v58 }
 0x36e   :  { %vm590_vm15 = vmand %vm2160_vm5, %vm582_vm8 }
 0x36f   :  { %vm611_vm2 = vmand %vm2166_vm10, %vm603_vm6 }
 0x370   :  { %1731 = vmatpush3.bf16.msk.msra.mxu1 %vm1728_vm11, %v1828_v4  ;;  %vm612_vm9 = vmand %vm2166_vm10, %vm604_vm7  ;;  %vm606_vm11 = vcmp.eq.s32.totalorder %v2024_v8, %v598_v62 }
 0x371   :  { %vm619_vm14 = vmor %vm589_vm4, %vm611_vm2 }
 0x372   :  { %vm620_vm3 = vmor %vm590_vm15, %vm612_vm9 }
 0x373   :  { %vm1732_vm12 = vmpackc.low %vm620_vm3, %vm619_vm14 }
 0x374   :  { %1733 = vmatprep.subr.msk.bf16.mxu1 %vm1732_vm12, %v1828_v4  ;;  %vm2221_vm8 = vmand %vm2160_vm5, %vm583_vm13  ;;  %vm725_vm13 = vcmask 130048  }
 0x375   :  { %1735 = vmatpush3.bf16.msk.msra.mxu1 %vm1732_vm12, %v1828_v4  ;;  %vm592_vm6 = vmand %vm2160_vm5, %vm584_vm1  ;;  %vm2434_vm5 = vcmask 523264   ;;  %vm720_vm12 = vcmask 359424   ;;  %vm927_vm1 = vcmask 916480  }
 0x376   :  { %vm613_vm4 = vmand %vm2166_vm10, %vm605_vm0  ;;  %vm43_vm0 = vcmask 269312  }
 0x377   :  { %vm614_vm7 = vmand %vm2166_vm10, %vm606_vm11  ;;  %45 = vst.msk [vmem:[#allocation9 + $0x8] sm:$0xff] %vm43_vm0, %v1822_v5 }
 0x378   :  { %vm621_vm15 = vmor %vm2221_vm8, %vm613_vm4  ;;  %44 = vst.msk [vmem:[#allocation9] sm:$0xff] %vm43_vm0, %v1822_v5  ;;  %vm810_vm8 = vcmask 261248   ;;  %vm1058_vm4 = vcmp.lt.s32.totalorder %v1925_v42, 8 }
 0x379   :  { %vm622_vm2 = vmor %vm592_vm6, %vm614_vm7  ;;  %46 = vst.msk [vmem:[#allocation9 + $0x10] sm:$0xff] %vm43_vm0, %v1822_v5 }
 0x37a   :  { %vm1736_vm9 = vmpackc.low %vm622_vm2, %vm621_vm15  ;;  %47 = vst.msk [vmem:[#allocation9 + $0x18] sm:$0xff] %vm43_vm0, %v1822_v5 }
 0x37b   :  { %1737 = vmatprep.subr.msk.bf16.mxu1 %vm1736_vm9, %v1828_v4  ;;  %vm2435_vm14 = vmmov %vm2434_vm5 }
 0x37c   :  { %1739 = vmatpush3.bf16.msk.msra.mxu1 %vm1736_vm9, %v1828_v4  ;;  %vm2436_vm10 = vmmov %vm2434_vm5 }
 0x37d   :  { %vm2437_vm3 = vmmov %vm2434_vm5 }
 0x43a   :  { %v1603_v3 = vpop.f32.mrb[0].mxu1 }
 0x43b   :  { %v553_v7 = vadd.f32 %v1603_v3, %v472_v2  ;;  %v547_v9 = vpop.f32.mrb[1].mxu1 }
 0x43c   :  { %v548_v10 = vadd.f32 %v547_v9, %v467_v6 }
 0x43d   :  { %v557_v8 = vmax.f32 %v553_v7, 0.0 }
 0x43e   :  { %v556_v11 = vmax.f32 %v548_v10, 0.0 }
 0x43f   :  { %559 = vst.msk [vmem:[#allocation6 + $0x8] sm:$0xff] %vm2434_vm5, %v557_v8 }
 0x440   :  { %558 = vst.msk [vmem:[#allocation6] sm:$0xff] %vm2435_vm14, %v556_v11 }
 0x446   :  { %v561_v12 = vld [vmem:[#allocation6 + $0x8] sm:$0xff] }
 0x447   :  { %566 = vrot.lane.b32.xlu0 %v561_v12, %s1825_s0  ;;  %v560_v14 = vld [vmem:[#allocation6] sm:$0xff] }
 0x448   :  { %564 = vrot.lane.b32.xlu1 %v560_v14, %s1825_s0 }
 0x4b9   :  { %v567_v15 = vpop.permute.xlu0 %566 }
 0x4ba   :  { %v565_v16 = vpop.permute.xlu1 %564  ;;  %v571_v18 = vmax.f32 %v561_v12, %v567_v15 }
 0x4bb   :  { %v570_v17 = vmax.f32 %v560_v14, %v565_v16 }
 0x4bd   :  { %1620 = vmatprep.mubr.msk.f32.mxu1 %vm2436_vm10, %v570_v17  ;;  %v886_v17 = vld [vmem:[%s2406_s5 + $0x8] sm:$0xff] }
 0x4be   :  { %1621 = vmatmul.mubr.msk.f32.vlgmr.msra.gmra.mrb[2].mxu1 %vm2437_vm3, %v571_v18  ;;  %v887_v18 = vld [vmem:[%s2406_s5 + $0x10] sm:$0xff] }
 0x4bf   :  { %1651 = vmatprep.mubr.msk.f32.mxu1 %vm927_vm1, %v885_v23 }
 0x591   :  { %v1622_v19 = vpop.f32.mrb[2].mxu1 }
 0x592   :  { %722 = vst.msk [vmem:[#allocation7 + $0x8] sm:$0xff] %vm720_vm12, %v1622_v19  ;;  %v711_v20 = vpop.f32.mrb[3].mxu1  ;;  %v888_v19 = vld [vmem:[%s2406_s5 + $0x18] sm:$0xff] }
 0x593   :  { %721 = vst.msk [vmem:[#allocation7] sm:$0xff] %vm720_vm12, %v711_v20  ;;  %v1060_v20 = vmul.u32 2, %v1925_v42 }
 0x595   :  { %vm1061_vm7 = vcmp.eq.s32.totalorder %v1911_v13, %v1060_v20  ;;  %vm1062_vm15 = vcmp.eq.s32.totalorder %v1928_v51, %v1060_v20 }
 0x596   :  { %vm1065_vm9 = vmand %vm1058_vm4, %vm1061_vm7 }
 0x597   :  { %vm1066_vm5 = vmand %vm1058_vm4, %vm1062_vm15 }
 0x599   :  { %v801_v21 = vld [vmem:[#allocation7 + $0x8] sm:$0xff] }
 0x59a   :  { %806 = vrot.lane.b32.xlu0 %v801_v21, %s1832_s20  ;;  %v800_v22 = vld [vmem:[#allocation7] sm:$0xff]  ;;  %727 = vst.msk [vmem:[#allocation8 + $0x8] sm:$0xff] %vm725_vm13, %v801_v21 }
 0x59b   :  { %804 = vrot.lane.b32.xlu1 %v800_v22, %s1832_s20  ;;  %726 = vst.msk [vmem:[#allocation8] sm:$0xff] %vm725_vm13, %v800_v22 }
 0x59e   :  { %734 = vrot.lane.b32.xlu0 %v801_v21, %s1825_s0 }
 0x59f   :  { %732 = vrot.lane.b32.xlu1 %v800_v22, %s1825_s0 }
 0x5a2   :  { %819 = vrot.lane.b32.xlu0 %v801_v21, %s1834_s22 }
 0x5a3   :  { %817 = vrot.lane.b32.xlu1 %v800_v22, %s1834_s22 }
 0x5a6   :  { %746 = vrot.lane.b32.xlu0 %v801_v21, %s1826_s2 }
 0x5a7   :  { %744 = vrot.lane.b32.xlu1 %v800_v22, %s1826_s2 }
 0x5aa   :  { %831 = vrot.lane.b32.xlu0 %v801_v21, %s1835_s27 }
 0x5ab   :  { %829 = vrot.lane.b32.xlu1 %v800_v22, %s1835_s27 }
 0x5ae   :  { %758 = vrot.lane.b32.xlu0 %v801_v21, %s1833_s21 }
 0x5af   :  { %756 = vrot.lane.b32.xlu1 %v800_v22, %s1833_s21 }
 0x5b2   :  { %843 = vrot.lane.b32.xlu0 %v801_v21, %s1836_s3 }
 0x5b3   :  { %841 = vrot.lane.b32.xlu1 %v800_v22, %s1836_s3 }
 0x5b6   :  { %770 = vrot.lane.b32.xlu0 %v801_v21, %s1830_s18 }
 0x5b7   :  { %768 = vrot.lane.b32.xlu1 %v800_v22, %s1830_s18 }
 0x5ba   :  { %855 = vrot.lane.b32.xlu0 %v801_v21, %s1837_s10 }
 0x5bb   :  { %853 = vrot.lane.b32.xlu1 %v800_v22, %s1837_s10 }
 0x5be   :  { %782 = vrot.lane.b32.xlu0 %v801_v21, %s1831_s19 }
 0x5bf   :  { %780 = vrot.lane.b32.xlu1 %v800_v22, %s1831_s19 }
 0x5c2   :  { %867 = vrot.lane.b32.xlu0 %v801_v21, %s1838_s11 }
 0x5c3   :  { %865 = vrot.lane.b32.xlu1 %v800_v22, %s1838_s11 }
 0x5c6   :  { %794 = vrot.lane.b32.xlu0 %v801_v21, %s1832_s20 }
 0x5c7   :  { %792 = vrot.lane.b32.xlu1 %v800_v22, %s1832_s20 }
 0x5ca   :  { %879 = vrot.lane.b32.xlu0 %v801_v21, %s1839_s12  ;;  %v1463_v21 = vadd.s32 4294967288, %v1925_v42 }
 0x5cb   :  { %877 = vrot.lane.b32.xlu1 %v800_v22, %s1839_s12 }
 0x5cc   :  { %vm1070_vm11 = vcmp.ge.s32.totalorder %v1463_v21, 0  ;;  %vm1071_vm6 = vcmp.lt.s32.totalorder %v1463_v21, 8  ;;  %v1073_v22 = vmul.u32 2, %v1463_v21 }
 0x5cd   :  { %vm2325_vm2 = vmand %vm1070_vm11, %vm1071_vm6  ;;  %vm1063_vm11 = vcmp.eq.s32.totalorder %v1935_v56, %v1060_v20  ;;  %vm1064_vm6 = vcmp.eq.s32.totalorder %v1965_v1, %v1060_v20 }
 0x5ce   :  { %914 = vperm.xlu0 %1812, %v904_v24   ;;  %v1074_v24 = vadd.s32 16, %v1073_v22  ;;  %vm2346_vm15 = vmand %vm1058_vm4, %vm1063_vm11 }
 0x5cf   :  { %909 = vperm.xlu1 %1813, %v903_v25  }
 0x5d0   :  { %vm1075_vm14 = vcmp.eq.s32.totalorder %v1911_v13, %v1074_v24  ;;  %vm1076_vm10 = vcmp.eq.s32.totalorder %v1928_v51, %v1074_v24  ;;  %vm1077_vm7 = vcmp.eq.s32.totalorder %v1935_v56, %v1074_v24 }
 0x5d1   :  { %vm1079_vm3 = vmand %vm2325_vm2, %vm1075_vm14 }
 0x5d2   :  { %924 = vperm.xlu0 %1812, %v906_v26   ;;  %vm1080_vm12 = vmand %vm2325_vm2, %vm1076_vm10 }
 0x5d3   :  { %919 = vperm.xlu1 %1813, %v905_v27   ;;  %vm1084_vm0 = vmor %vm1066_vm5, %vm1080_vm12 }
 0x5d4   :  { %vm1068_vm5 = vmand %vm1058_vm4, %vm1064_vm6  ;;  %vm2442_vm4 = vcmask 261120  }
 0x5d5   :  { %vm1081_vm14 = vmand %vm2325_vm2, %vm1077_vm7 }
 0x60c   :  { %v807_v28 = vpop.permute.xlu0 %806 }
 0x60d   :  { %812 = vst.msk [vmem:[#allocation8 + $0x8] sm:$0xff] %vm810_vm8, %v807_v28  ;;  %v805_v29 = vpop.permute.xlu1 %804 }
 0x60e   :  { %811 = vst.msk [vmem:[#allocation8] sm:$0xff] %vm810_vm8, %v805_v29 }
 0x610   :  { %v735_v30 = vpop.permute.xlu0 %734 }
 0x611   :  { %739 = vst.msk [vmem:[#allocation8 + $0x18] sm:$0xff] %vm725_vm13, %v735_v30  ;;  %v733_v31 = vpop.permute.xlu1 %732 }
 0x612   :  { %738 = vst.msk [vmem:[#allocation8 + $0x10] sm:$0xff] %vm725_vm13, %v733_v31 }
 0x614   :  { %v820_v32 = vpop.permute.xlu0 %819  ;;  %v890_v33 = vld [vmem:[#allocation8 + $0x8] sm:$0xff] }
 0x615   :  { %824 = vst.msk [vmem:[#allocation8 + $0x18] sm:$0xff] %vm810_vm8, %v820_v32  ;;  %v818_v34 = vpop.permute.xlu1 %817  ;;  %v889_v35 = vld [vmem:[#allocation8] sm:$0xff] }
 0x616   :  { %823 = vst.msk [vmem:[#allocation8 + $0x10] sm:$0xff] %vm810_vm8, %v818_v34  ;;  %v1740_v5 = vpack.c.bf16 %v890_v33, %v889_v35 }
 0x618   :  { %v747_v36 = vpop.permute.xlu0 %746  ;;  %1741 = vmatprep.subr.bf16.mxu1 %v1740_v5 }
 0x619   :  { %751 = vst.msk [vmem:[#allocation8 + $0x28] sm:$0xff] %vm725_vm13, %v747_v36  ;;  %v745_v37 = vpop.permute.xlu1 %744  ;;  %1743 = vmatpush3.bf16.msra.mxu1 %v1740_v5 }
 0x61a   :  { %750 = vst.msk [vmem:[#allocation8 + $0x20] sm:$0xff] %vm725_vm13, %v745_v37 }
 0x61c   :  { %v832_v38 = vpop.permute.xlu0 %831  ;;  %v892_v39 = vld [vmem:[#allocation8 + $0x18] sm:$0xff] }
 0x61d   :  { %836 = vst.msk [vmem:[#allocation8 + $0x28] sm:$0xff] %vm810_vm8, %v832_v38  ;;  %v830_v40 = vpop.permute.xlu1 %829  ;;  %v891_v41 = vld [vmem:[#allocation8 + $0x10] sm:$0xff] }
 0x61e   :  { %835 = vst.msk [vmem:[#allocation8 + $0x20] sm:$0xff] %vm810_vm8, %v830_v40  ;;  %v1744_v43 = vpack.c.bf16 %v892_v39, %v891_v41 }
 0x620   :  { %v759_v44 = vpop.permute.xlu0 %758  ;;  %1745 = vmatprep.subr.bf16.mxu1 %v1744_v43 }
 0x621   :  { %763 = vst.msk [vmem:[#allocation8 + $0x38] sm:$0xff] %vm725_vm13, %v759_v44  ;;  %v757_v45 = vpop.permute.xlu1 %756  ;;  %1747 = vmatpush3.bf16.msra.mxu1 %v1744_v43  ;;  %v1302_v44 = vld [vmem:[%s2407_s8] sm:$0xff] }
 0x622   :  { %762 = vst.msk [vmem:[#allocation8 + $0x30] sm:$0xff] %vm725_vm13, %v757_v45  ;;  %v1192_v45 = vmul.u32 8, %v1925_v42 }
 0x624   :  { %v844_v46 = vpop.permute.xlu0 %843  ;;  %v894_v47 = vld [vmem:[#allocation8 + $0x28] sm:$0xff] }
 0x625   :  { %848 = vst.msk [vmem:[#allocation8 + $0x38] sm:$0xff] %vm810_vm8, %v844_v46  ;;  %v842_v48 = vpop.permute.xlu1 %841  ;;  %v893_v49 = vld [vmem:[#allocation8 + $0x20] sm:$0xff]  ;;  %v1193_v46 = vsub.s32 %v1911_v13, %v1192_v45 }
 0x626   :  { %847 = vst.msk [vmem:[#allocation8 + $0x30] sm:$0xff] %vm810_vm8, %v842_v48  ;;  %v1748_v50 = vpack.c.bf16 %v894_v47, %v893_v49  ;;  %v1194_v47 = vsub.s32 %v1928_v51, %v1192_v45  ;;  %v1840_v48 = vmov 0.125|0.125  }
 0x627   :  { %vm1195_vm11 = vcmp.ge.s32.totalorder %v1193_v46, 0  ;;  %vm1197_vm7 = vcmp.lt.s32.totalorder %v1193_v46, 8 }
 0x628   :  { %v771_v52 = vpop.permute.xlu0 %770  ;;  %1749 = vmatprep.subr.bf16.mxu1 %v1748_v50  ;;  %vm1196_vm6 = vcmp.ge.s32.totalorder %v1194_v47, 0 }
 0x629   :  { %775 = vst.msk [vmem:[#allocation8 + $0x48] sm:$0xff] %vm725_vm13, %v771_v52  ;;  %v769_v53 = vpop.permute.xlu1 %768  ;;  %1751 = vmatpush3.bf16.msra.mxu1 %v1748_v50 }
 0x62a   :  { %774 = vst.msk [vmem:[#allocation8 + $0x40] sm:$0xff] %vm725_vm13, %v769_v53 }
 0x62c   :  { %v856_v54 = vpop.permute.xlu0 %855  ;;  %v896_v55 = vld [vmem:[#allocation8 + $0x38] sm:$0xff] }
 0x62d   :  { %860 = vst.msk [vmem:[#allocation8 + $0x48] sm:$0xff] %vm810_vm8, %v856_v54  ;;  %v854_v57 = vpop.permute.xlu1 %853  ;;  %v895_v58 = vld [vmem:[#allocation8 + $0x30] sm:$0xff] }
 0x62e   :  { %859 = vst.msk [vmem:[#allocation8 + $0x40] sm:$0xff] %vm810_vm8, %v854_v57  ;;  %v1752_v59 = vpack.c.bf16 %v896_v55, %v895_v58 }
 0x630   :  { %v783_v60 = vpop.permute.xlu0 %782  ;;  %1753 = vmatprep.subr.bf16.mxu1 %v1752_v59 }
 0x631   :  { %787 = vst.msk [vmem:[#allocation8 + $0x58] sm:$0xff] %vm725_vm13, %v783_v60  ;;  %v781_v61 = vpop.permute.xlu1 %780  ;;  %1755 = vmatpush3.bf16.msra.mxu1 %v1752_v59  ;;  %v1300_v60 = vld [vmem:[%s2408_s7] sm:$0xff] }
 0x632   :  { %786 = vst.msk [vmem:[#allocation8 + $0x50] sm:$0xff] %vm725_vm13, %v781_v61 }
 0x634   :  { %v868_v62 = vpop.permute.xlu0 %867  ;;  %v898_v63 = vld [vmem:[#allocation8 + $0x48] sm:$0xff] }
 0x635   :  { %872 = vst.msk [vmem:[#allocation8 + $0x58] sm:$0xff] %vm810_vm8, %v868_v62  ;;  %v866_v0 = vpop.permute.xlu1 %865  ;;  %v897_v2 = vld [vmem:[#allocation8 + $0x40] sm:$0xff] }
 0x636   :  { %871 = vst.msk [vmem:[#allocation8 + $0x50] sm:$0xff] %vm810_vm8, %v866_v0  ;;  %v1756_v3 = vpack.c.bf16 %v898_v63, %v897_v2 }
 0x638   :  { %v795_v6 = vpop.permute.xlu0 %794  ;;  %1757 = vmatprep.subr.bf16.mxu1 %v1756_v3 }
 0x639   :  { %799 = vst.msk [vmem:[#allocation8 + $0x68] sm:$0xff] %vm725_vm13, %v795_v6  ;;  %v793_v7 = vpop.permute.xlu1 %792  ;;  %1759 = vmatpush3.bf16.msra.mxu1 %v1756_v3  ;;  %v1301_v6 = vld [vmem:[%s2408_s7 + $0x8] sm:$0xff] }
 0x63a   :  { %798 = vst.msk [vmem:[#allocation8 + $0x60] sm:$0xff] %vm725_vm13, %v793_v7 }
 0x63c   :  { %v880_v9 = vpop.permute.xlu0 %879  ;;  %v900_v10 = vld [vmem:[#allocation8 + $0x58] sm:$0xff] }
 0x63d   :  { %884 = vst.msk [vmem:[#allocation8 + $0x68] sm:$0xff] %vm810_vm8, %v880_v9  ;;  %v878_v8 = vpop.permute.xlu1 %877  ;;  %v899_v11 = vld [vmem:[#allocation8 + $0x50] sm:$0xff] }
 0x63e   :  { %883 = vst.msk [vmem:[#allocation8 + $0x60] sm:$0xff] %vm810_vm8, %v878_v8  ;;  %v1760_v12 = vpack.c.bf16 %v900_v10, %v899_v11 }
 0x640   :  { %1761 = vmatprep.subr.bf16.mxu1 %v1760_v12 }
 0x641   :  { %1763 = vmatpush3.bf16.msra.mxu1 %v1760_v12 }
 0x644   :  { %v902_v14 = vld [vmem:[#allocation8 + $0x68] sm:$0xff] }
 0x645   :  { %v901_v15 = vld [vmem:[#allocation8 + $0x60] sm:$0xff] }
 0x646   :  { %v1764_v16 = vpack.c.bf16 %v902_v14, %v901_v15 }
 0x648   :  { %1765 = vmatprep.subr.bf16.mxu1 %v1764_v16 }
 0x649   :  { %1767 = vmatpush3.bf16.msra.mxu1 %v1764_v16 }
 0x64c   :  { %1652 = vmatmul.mubr.msk.f32.vlgmr.msra.gmra.mrb[4].mxu1 %vm927_vm1, %v886_v17 }
 0x64d   :  { %1654 = vmatprep.mubr.msk.f32.mxu1 %vm927_vm1, %v887_v18  ;;  %v915_v26 = vpop.permute.xlu0 %914 }
 0x64e   :  { %v910_v27 = vpop.permute.xlu1 %909 }
 0x650   :  { %1655 = vmatmul.mubr.msk.f32.gmra.mrb[6].mxu1 %vm927_vm1, %v888_v19  ;;  %vm1083_vm1 = vmor %vm1065_vm9, %vm1079_vm3  ;;  %vm1078_vm9 = vcmp.eq.s32.totalorder %v1965_v1, %v1074_v24 }
 0x651   :  { %vm1768_vm8 = vmpackc.low %vm1084_vm0, %vm1083_vm1  ;;  %v925_v31 = vpop.permute.xlu0 %924 }
 0x652   :  { %1769 = vmatprep.subr.msk.bf16.mxu0 %vm1768_vm8, %v1828_v4  ;;  %vm1082_vm10 = vmand %vm2325_vm2, %vm1078_vm9  ;;  %v920_v34 = vpop.permute.xlu1 %919 }
 0x653   :  { %1771 = vmatpush3.bf16.msk.msra.mxu0 %vm1768_vm8, %v1828_v4  ;;  %vm1085_vm3 = vmor %vm2346_vm15, %vm1081_vm14  ;;  %vm1198_vm15 = vcmp.lt.s32.totalorder %v1194_v47, 8 }
 0x654   :  { %vm1086_vm12 = vmor %vm1068_vm5, %vm1082_vm10 }
 0x655   :  { %vm1772_vm1 = vmpackc.low %vm1086_vm12, %vm1085_vm3 }
 0x656   :  { %1773 = vmatprep.subr.msk.bf16.mxu0 %vm1772_vm1, %v1828_v4  ;;  %vm2443_vm2 = vmmov %vm2442_vm4 }
 0x657   :  { %1775 = vmatpush3.bf16.msk.msra.mxu0 %vm1772_vm1, %v1828_v4  ;;  %vm2444_vm0 = vmmov %vm2443_vm2  ;;  %v1303_v4 = vld [vmem:[%s2407_s8 + $0x8] sm:$0xff] }
 0x658   :  { %vm2445_vm8 = vmmov %vm2444_vm0 }
 0x659   :  { %vm1199_vm9 = vmand %vm1195_vm11, %vm1197_vm7 }
 0x65a   :  { %vm1200_vm5 = vmand %vm1196_vm6, %vm1198_vm15 }
 0x65b   :  { %vm1776_vm14 = vmpackc.low %vm1200_vm5, %vm1199_vm9 }
 0x65c   :  { %1777 = vmatprep.subr.msk.bf16.mxu0 %vm1776_vm14, %v1840_v48  ;;  %vm2446_vm10 = vmmov %vm2444_vm0 }
 0x65d   :  { %vm2447_vm3 = vmmov %vm2444_vm0 }
 0x65e   :  { %vm2448_vm12 = vmmov %vm2444_vm0 }
 0x65f   :  { %vm2449_vm1 = vmmov %vm2444_vm0 }
 0x71f   :  { %v1653_v28 = vpop.f32.mrb[4].mxu1 }
 0x720   :  { %v1012_v56 = vadd.f32 %v1653_v28, %v915_v26  ;;  %v1006_v29 = vpop.f32.mrb[5].mxu1 }
 0x721   :  { %v1007_v30 = vadd.f32 %v1006_v29, %v910_v27 }
 0x722   :  { %v1026_v1 = vmax.f32 %v1012_v56, 0.0 }
 0x723   :  { %v1025_v32 = vmax.f32 %v1007_v30, 0.0  ;;  %v1656_v33 = vpop.f32.mrb[6].mxu1 }
 0x724   :  { %1030 = vst.msk [vmem:[#allocation9 + $0x8] sm:$0xff] %vm2442_vm4, %v1026_v1  ;;  %v1022_v35 = vadd.f32 %v1656_v33, %v925_v31  ;;  %v1016_v5 = vpop.f32.mrb[7].mxu1  ;;  %vm2450_vm4 = vmmov %vm2444_vm0 }
 0x725   :  { %1029 = vst.msk [vmem:[#allocation9] sm:$0xff] %vm2443_vm2, %v1025_v32  ;;  %v1017_v36 = vadd.f32 %v1016_v5, %v920_v34  ;;  %vm1395_vm2 = vcmask 15360  }
 0x726   :  { %v1028_v37 = vmax.f32 %v1022_v35, 0.0 }
 0x727   :  { %v1027_v38 = vmax.f32 %v1017_v36, 0.0 }
 0x728   :  { %1032 = vst.msk [vmem:[#allocation9 + $0x18] sm:$0xff] %vm2444_vm0, %v1028_v37 }
 0x729   :  { %1031 = vst.msk [vmem:[#allocation9 + $0x10] sm:$0xff] %vm2445_vm8, %v1027_v38 }
 0x72b   :  { %v1034_v39 = vld [vmem:[#allocation9 + $0x8] sm:$0xff] }
 0x72c   :  { %1043 = vrot.lane.b32.xlu0 %v1034_v39, %s1825_s0  ;;  %v1033_v40 = vld [vmem:[#allocation9] sm:$0xff] }
 0x72d   :  { %1041 = vrot.lane.b32.xlu1 %v1033_v40, %s1825_s0 }
 0x72f   :  { %v1036_v41 = vld [vmem:[#allocation9 + $0x18] sm:$0xff] }
 0x730   :  { %1047 = vrot.lane.b32.xlu0 %v1036_v41, %s1825_s0  ;;  %v1035_v43 = vld [vmem:[#allocation9 + $0x10] sm:$0xff] }
 0x731   :  { %1045 = vrot.lane.b32.xlu1 %v1035_v43, %s1825_s0 }
 0x734   :  { %1311 = vperm.xlu0 %1812, %v1303_v4  }
 0x735   :  { %1306 = vperm.xlu1 %1813, %v1302_v44  }
 0x79e   :  { %v1044_v49 = vpop.permute.xlu0 %1043 }
 0x79f   :  { %v1042_v50 = vpop.permute.xlu1 %1041  ;;  %v1054_v53 = vmax.f32 %v1034_v39, %v1044_v49 }
 0x7a0   :  { %v1053_v52 = vmax.f32 %v1033_v40, %v1042_v50 }
 0x7a2   :  { %v1048_v54 = vpop.permute.xlu0 %1047  ;;  %1665 = vmatprep.mubr.msk.f32.mxu0 %vm2446_vm10, %v1053_v52 }
 0x7a3   :  { %1666 = vmatmul.mubr.msk.f32.vlgmr.msra.gmra.mrb[2].mxu0 %vm2447_vm3, %v1054_v53  ;;  %v1046_v13 = vpop.permute.xlu1 %1045  ;;  %v1056_v51 = vmax.f32 %v1036_v41, %v1048_v54 }
 0x7a4   :  { %v1055_v42 = vmax.f32 %v1035_v43, %v1046_v13  ;;  %1779 = vmatpush3.bf16.msk.msra.mxu0 %vm1776_vm14, %v1840_v48 }
 0x7a6   :  { %1668 = vmatprep.mubr.msk.f32.mxu0 %vm2448_vm12, %v1055_v42 }
 0x7a7   :  { %1669 = vmatmul.mubr.msk.f32.gmra.mrb[4].mxu0 %vm2449_vm1, %v1056_v51 }
 0x7b3   :  { %v1312_v7 = vpop.permute.xlu0 %1311 }
 0x7b4   :  { %v1307_v10 = vpop.permute.xlu1 %1306 }
 0x876   :  { %v1667_v55 = vpop.f32.mrb[2].mxu0 }
 0x877   :  { %v1173_v57 = vpop.f32.mrb[3].mxu0 }
 0x878   :  { %1675 = vmatprep.mubr.msk.f32.mxu0 %vm725_vm13, %v1173_v57 }
 0x879   :  { %1676 = vmatmul.mubr.msk.f32.vlgmr.msra.gmra.mrb[6].mxu0 %vm725_vm13, %v1667_v55 }
 0x87a   :  { %v1670_v58 = vpop.f32.mrb[4].mxu0 }
 0x87b   :  { %v1183_v59 = vpop.f32.mrb[5].mxu0 }
 0x87c   :  { %1678 = vmatprep.mubr.msk.f32.mxu0 %vm725_vm13, %v1183_v59 }
 0x87d   :  { %1679 = vmatmul.mubr.msk.f32.gmra.mrb[8].mxu0 %vm725_vm13, %v1670_v58  ;;  %vm2451_vm13 = vmmov %vm2444_vm0 }
 0x87e   :  { %1689 = vmatprep.mubr.msk.f32.mxu0 %vm2450_vm4, %v1300_v60 }
 0x94c   :  { %v1677_v61 = vpop.f32.mrb[6].mxu0 }
 0x94d   :  { %v1281_v62 = vpop.f32.mrb[7].mxu0 }
 0x94e   :  { %v1780_v63 = vpack.c.bf16 %v1677_v61, %v1281_v62 }
 0x950   :  { %v1680_v0 = vpop.f32.mrb[8].mxu0  ;;  %1781 = vmatprep.subr.bf16.mxu0 %v1780_v63 }
 0x951   :  { %v1291_v2 = vpop.f32.mrb[9].mxu0  ;;  %1783 = vmatpush3.bf16.msra.mxu0 %v1780_v63 }
 0x952   :  { %v1784_v3 = vpack.c.bf16 %v1680_v0, %v1291_v2 }
 0x954   :  { %1785 = vmatprep.subr.bf16.mxu0 %v1784_v3 }
 0x955   :  { %1787 = vmatpush3.bf16.msra.mxu0 %v1784_v3 }
 0x958   :  { %1690 = vmatmul.mubr.msk.f32.vlgmr.msra.gmra.mrb[10].mxu0 %vm2451_vm13, %v1301_v6 }
 0xa2b   :  { %v1691_v9 = vpop.f32.mrb[10].mxu0 }
 0xa2c   :  { %v1392_v8 = vadd.f32 %v1691_v9, %v1312_v7  ;;  %v1386_v11 = vpop.f32.mrb[11].mxu0 }
 0xa2d   :  { %v1387_v12 = vadd.f32 %v1386_v11, %v1307_v10 }
 0xa2e   :  { %1397 = vst.msk [vmem:[%s2409_s9 + $0x8] sm:$0xff] %vm1395_vm2, %v1392_v8 }
 0xa2f   :  { %1396 = vst.msk [vmem:[%s2409_s9] sm:$0xff] %vm1395_vm2, %v1387_v12 }

</bundles_post_ra>
